<compile_context>
chip_gen: v6e
topology: v6e:2x2x1
jax: 0.10.0
libtpu: 0.0.40
codegen_flags: <defaults>
</compile_context>

<pallas_src>
import functools
import math

import jax
import jax.numpy as jnp
from jax.experimental import pallas as pl
from jax.experimental.pallas import tpu as pltpu


# ---------------------------------------------------------------------------
# Pallas kernel: one batch element per grid step, whole layer fused.
# ---------------------------------------------------------------------------
def _encoder_row0_kernel(x_ref, mb_ref, wqkvo_ref, w1_ref, w2_ref, vecs_ref,
                         b1_ref, o_ref, *, d_model, nheads, head_dim):
    D, H, hd = d_model, nheads, head_dim

    x = x_ref[...]                         # [S, D]  f32
    mb = mb_ref[...]                       # [1, S]  additive key-padding bias
    vecs = vecs_ref[...]                   # [9, D]  packed D-sized vectors
    g1, be1 = vecs[0:1], vecs[1:2]         # LayerNorm1 gamma / beta
    g2, be2 = vecs[2:3], vecs[3:4]         # LayerNorm2 gamma / beta
    bq, bk, bv = vecs[4:5], vecs[5:6], vecs[6:7]
    bo, b2 = vecs[7:8], vecs[8:9]

    def layer_norm(h, g, b):               # f32 tail (biased variance, eps=1e-5)
        mu = jnp.mean(h, axis=-1, keepdims=True)
        var = jnp.mean(jnp.square(h - mu), axis=-1, keepdims=True)
        return (h - mu) * jax.lax.rsqrt(var + 1e-5) * g + b

    # ---- pre-norm self attention -----------------------------------------
    wqkvo = wqkvo_ref[...]                 # [D, 4D]  (Q|K|V|O projections)
    hn = layer_norm(x, g1, be1)            # [S, D]
    qkvo = jnp.dot(hn.astype(wqkvo.dtype), wqkvo,
                   preferred_element_type=jnp.float32)      # [S, 4D], one MXU tile
    q0 = qkvo[0:1, 0:D] + bq               # only query at seq position 0 is needed
    k = qkvo[:, D:2 * D] + bk              # [S, D]
    v = qkvo[:, 2 * D:3 * D] + bv          # [S, D]

    scale = 1.0 / math.sqrt(hd)
    head_outs = []
    for hh in range(H):                    # static unroll over heads
        lo, hi = hh * hd, (hh + 1) * hd
        q_h = q0[:, lo:hi] * scale                                   # [1, hd]
        k_h = k[:, lo:hi]                                            # [S, hd]
        v_h = v[:, lo:hi]                                            # [S, hd]
        s_h = jax.lax.dot_general(q_h, k_h, (((1,), (1,)), ((), ())),
                                  preferred_element_type=jnp.float32)  # [1, S]
        s_h = s_h + mb                                               # key padding
        s_h = s_h - jnp.max(s_h, axis=-1, keepdims=True)
        p_h = jnp.exp(s_h)
        p_h = p_h / jnp.sum(p_h, axis=-1, keepdims=True)
        head_outs.append(jnp.dot(p_h, v_h,
                                 preferred_element_type=jnp.float32))  # [1, hd]
    attn0 = jnp.concatenate(head_outs, axis=-1)                      # [1, D]

    wo = wqkvo[:, 3 * D:4 * D]                                       # [D, D]
    sa0 = jnp.dot(attn0.astype(wo.dtype), wo,
                  preferred_element_type=jnp.float32) + bo           # out-proj
    h1 = x[0:1, :] + sa0                                             # residual

    # ---- pre-norm feed-forward (row 0 only) -------------------------------
    w1 = w1_ref[...]                        # [D, dff]
    w2 = w2_ref[...]                        # [dff, D]
    hn2 = layer_norm(h1, g2, be2)
    ff = jnp.dot(hn2.astype(w1.dtype), w1,
                 preferred_element_type=jnp.float32) + b1_ref[...]   # [1, dff]
    ff = jnp.maximum(ff, 0.0)                                        # relu
    ff2 = jnp.dot(ff.astype(w2.dtype), w2,
                  preferred_element_type=jnp.float32) + b2           # [1, D]
    o_ref[...] = (h1 + ff2).astype(o_ref.dtype)


# ---------------------------------------------------------------------------
# Wrapper: pack parameters, build specs, call the kernel.
# ---------------------------------------------------------------------------
def transformer_encoder_pallas(x, mask, p, compute_dtype=jnp.float32):
    """x: [B, S, D] f32 (batch-first module input), mask: [B, S] bool (True = pad).
    Returns [B, D] = encoder_output[seq position 0]."""
    B, S, D = x.shape
    H = int(p["nheads"])
    hd = D // H
    dff = p["lin1_b"].shape[0]

    # Packed weights (wrapper-side cast so HBM traffic also shrinks for bf16).
    wqkvo = jnp.concatenate([p["in_proj_w"].T, p["out_proj_w"].T],
                            axis=1).astype(compute_dtype)            # [D, 4D]
    w1 = p["lin1_w"].T.astype(compute_dtype)                         # [D, dff]
    w2 = p["lin2_w"].T.astype(compute_dtype)                         # [dff, D]
    vecs = jnp.stack([
        p["ln1_g"], p["ln1_b"], p["ln2_g"], p["ln2_b"],
        p["in_proj_b"][0:D], p["in_proj_b"][D:2 * D], p["in_proj_b"][2 * D:3 * D],
        p["out_proj_b"], p["lin2_b"],
    ], axis=0).astype(jnp.float32)                                   # [9, D]
    b1f = p["lin1_b"].reshape(1, dff).astype(jnp.float32)            # [1, dff]
    mask_bias = jnp.where(mask, jnp.float32(-1e9),
                          jnp.float32(0.0)).reshape(B, 1, S)
    x = x.astype(jnp.float32)

    kernel = functools.partial(_encoder_row0_kernel,
                               d_model=D, nheads=H, head_dim=hd)

    in_specs = [
        pl.BlockSpec((None, S, D), lambda b: (b, 0, 0)),   # x, per-batch block
        pl.BlockSpec((None, 1, S), lambda b: (b, 0, 0)),   # key-padding bias
        pl.BlockSpec((D, 4 * D), lambda b: (0, 0)),        # packed QKV+O proj
        pl.BlockSpec((D, dff), lambda b: (0, 0)),          # FFN W1^T
        pl.BlockSpec((dff, D), lambda b: (0, 0)),          # FFN W2^T
        pl.BlockSpec((9, D), lambda b: (0, 0)),            # packed D-sized vectors
        pl.BlockSpec((1, dff), lambda b: (0, 0)),          # FFN bias 1
    ]
    out_specs = pl.BlockSpec((None, 1, D), lambda b: (b, 0, 0))

    itemsize = jnp.dtype(compute_dtype).itemsize
    flops = B * (2 * S * D * 4 * D          # packed in-projection
                 + H * (4 * S * hd)         # scores + weighted sum (query row 0)
                 + 2 * D * D                # out projection
                 + 2 * D * dff + 2 * dff * D)  # FFN
    bytes_accessed = ((x.size + mask_bias.size + vecs.size + b1f.size + B * D) * 4
                      + (wqkvo.size + w1.size + w2.size) * itemsize)
    cost = pl.CostEstimate(flops=flops,
                           transcendentals=B * (H * S + 2 * S + 4),
                           bytes_accessed=bytes_accessed)

    out = pl.pallas_call(
        kernel,
        out_shape=jax.ShapeDtypeStruct((B, 1, D), jnp.float32),
        grid=(B,),
        in_specs=in_specs,
        out_specs=out_specs,
        compiler_params=pltpu.CompilerParams(
            dimension_semantics=("parallel",)),   # 2x on v7x dual-TC, free elsewhere
        cost_estimate=cost,
    )(x, mask_bias, wqkvo, w1, w2, vecs, b1f)
    return out.reshape(B, D)


# ---------------------------------------------------------------------------
# Pure-JAX reference (full-sequence computation, row 0 selected at the end).
# ---------------------------------------------------------------------------
def transformer_encoder_ref(x, mask, p):
    B, S, D = x.shape
    H = int(p["nheads"])
    hd = D // H

    def ln(h, g, b):
        mu = h.mean(-1, keepdims=True)
        var = ((h - mu) ** 2).mean(-1, keepdims=True)
        return (h - mu) / jnp.sqrt(var + 1e-5) * g + b

    hn = ln(x, p["ln1_g"], p["ln1_b"])
    qkv = hn @ p["in_proj_w"].T + p["in_proj_b"]
    q, k, v = jnp.split(qkv, 3, axis=-1)
    q = q.reshape(B, S, H, hd).transpose(0, 2, 1, 3)
    k = k.reshape(B, S, H, hd).transpose(0, 2, 1, 3)
    v = v.reshape(B, S, H, hd).transpose(0, 2, 1, 3)
    sc = jnp.einsum("bhqd,bhkd->bhqk", q, k) / math.sqrt(hd)
    sc = sc + jnp.where(mask, -1e9, 0.0)[:, None, None, :]
    at = jax.nn.softmax(sc, axis=-1)
    ao = jnp.einsum("bhqk,bhkd->bhqd", at, v).transpose(0, 2, 1, 3).reshape(B, S, D)
    ao = ao @ p["out_proj_w"].T + p["out_proj_b"]
    h1 = x + ao
    hn2 = ln(h1, p["ln2_g"], p["ln2_b"])
    ff = jax.nn.relu(hn2 @ p["lin1_w"].T + p["lin1_b"])
    ff = ff @ p["lin2_w"].T + p["lin2_b"]
    h2 = h1 + ff
    return h2[:, 0, :]   # == encoder_output[0] after the module's permute


# ---------------------------------------------------------------------------
# Deterministic parameter init (PyTorch layout: Linear weight is [out, in]).
# ---------------------------------------------------------------------------
def init_params(key, d_model, nheads, dff):
    ks = jax.random.split(key, 12)

    def dense(k, shape, fan_in):
        return jax.random.normal(k, shape, jnp.float32) / jnp.sqrt(fan_in)

    return dict(
        nheads=nheads,
        in_proj_w=dense(ks[0], (3 * d_model, d_model), d_model),
        in_proj_b=0.1 * jax.random.normal(ks[1], (3 * d_model,), jnp.float32),
        out_proj_w=dense(ks[2], (d_model, d_model), d_model),
        out_proj_b=0.1 * jax.random.normal(ks[3], (d_model,), jnp.float32),
        lin1_w=dense(ks[4], (dff, d_model), d_model),
        lin1_b=0.1 * jax.random.normal(ks[5], (dff,), jnp.float32),
        lin2_w=dense(ks[6], (d_model, dff), dff),
        lin2_b=0.1 * jax.random.normal(ks[7], (d_model,), jnp.float32),
        ln1_g=1.0 + 0.1 * jax.random.normal(ks[8], (d_model,), jnp.float32),
        ln1_b=0.1 * jax.random.normal(ks[9], (d_model,), jnp.float32),
        ln2_g=1.0 + 0.1 * jax.random.normal(ks[10], (d_model,), jnp.float32),
        ln2_b=0.1 * jax.random.normal(ks[11], (d_model,), jnp.float32),
    )


if __name__ == "__main__":
    key = jax.random.PRNGKey(0)

    B, S = 4, 8          # batch, sequence length
    D, H = 32, 4         # args.hidden_size, args.nheads
    DFF = 2048           # nn.TransformerEncoderLayer default dim_feedforward

    k_x, k_p = jax.random.split(key, 2)
    x = jax.random.normal(k_x, (B, S, D), jnp.float32)
    lengths = jnp.array([S, S - 3, S, S - 5], dtype=jnp.int32)[:B]
    mask = jnp.arange(S)[None, :] >= lengths[:, None]     # True = padded key
    params = init_params(k_p, D, H, DFF)

    ref = transformer_encoder_ref(x, mask, params)

    # f32 path (exact check)
    out_f32 = jax.block_until_ready(transformer_encoder_pallas(x, mask, params))
    if not jnp.allclose(out_f32, ref, atol=2e-3, rtol=2e-3):
        raise AssertionError("Pallas f32 kernel output mismatch vs reference")

    # bf16 matmul-operand path (f32 accumulate) — loose sanity check
    out_bf16 = jax.block_until_ready(
        transformer_encoder_pallas(x, mask, params, compute_dtype=jnp.bfloat16))
    if not jnp.allclose(out_bf16, ref, atol=1e-1, rtol=1e-1):
        raise AssertionError("Pallas bf16 kernel output mismatch vs reference")

    print("KERNEL_OK")
</pallas_src>

<mosaic_0001>
module attributes {stable_mosaic.version = 11 : i64} {
  func.func @_encoder_row0_kernel(%arg0: i32, %arg1: memref<1x8x32xf32, #tpu.memory_space<vmem>>, %arg2: memref<1x1x8xf32, #tpu.memory_space<vmem>>, %arg3: memref<32x128xf32, #tpu.memory_space<vmem>>, %arg4: memref<32x2048xf32, #tpu.memory_space<vmem>>, %arg5: memref<2048x32xf32, #tpu.memory_space<vmem>>, %arg6: memref<9x32xf32, #tpu.memory_space<vmem>>, %arg7: memref<1x2048xf32, #tpu.memory_space<vmem>>, %arg8: memref<1x1x32xf32, #tpu.memory_space<vmem>>) attributes {dimension_semantics = [#tpu.dimension_semantics<parallel>], iteration_bounds = array<i64: 4>, scalar_prefetch = 0 : i64, scratch_operands = 0 : i64, tpu.core_type = #tpu.core_type<tc>, window_params = [{transform_indices = @transform_0, window_bounds = array<i64: 1, 8, 32>}, {transform_indices = @transform_1, window_bounds = array<i64: 1, 1, 8>}, {pipeline_mode = #tpu.pipeline_mode<synchronous>, transform_indices = @transform_2, window_bounds = array<i64: 32, 128>}, {pipeline_mode = #tpu.pipeline_mode<synchronous>, transform_indices = @transform_3, window_bounds = array<i64: 32, 2048>}, {pipeline_mode = #tpu.pipeline_mode<synchronous>, transform_indices = @transform_4, window_bounds = array<i64: 2048, 32>}, {pipeline_mode = #tpu.pipeline_mode<synchronous>, transform_indices = @transform_5, window_bounds = array<i64: 9, 32>}, {pipeline_mode = #tpu.pipeline_mode<synchronous>, transform_indices = @transform_6, window_bounds = array<i64: 1, 2048>}, {transform_indices = @transform_7, window_bounds = array<i64: 1, 1, 32>}]} {
    %c0 = arith.constant 0 : index
    %c0_0 = arith.constant 0 : index
    %c0_1 = arith.constant 0 : index
    %0 = vector.load %arg1[%c0, %c0_0, %c0_1] : memref<1x8x32xf32, #tpu.memory_space<vmem>>, vector<1x8x32xf32>
    %1 = vector.shape_cast %0 : vector<1x8x32xf32> to vector<8x32xf32>
    %c0_2 = arith.constant 0 : index
    %c0_3 = arith.constant 0 : index
    %c0_4 = arith.constant 0 : index
    %2 = vector.load %arg2[%c0_2, %c0_3, %c0_4] : memref<1x1x8xf32, #tpu.memory_space<vmem>>, vector<1x1x8xf32>
    %3 = vector.shape_cast %2 : vector<1x1x8xf32> to vector<1x8xf32>
    %c0_5 = arith.constant 0 : index
    %c0_6 = arith.constant 0 : index
    %4 = vector.load %arg6[%c0_5, %c0_6] : memref<9x32xf32, #tpu.memory_space<vmem>>, vector<9x32xf32>
    %5 = vector.extract_strided_slice %4 {offsets = [0, 0], sizes = [1, 32], strides = [1, 1]} : vector<9x32xf32> to vector<1x32xf32>
    %6 = vector.extract_strided_slice %4 {offsets = [1, 0], sizes = [1, 32], strides = [1, 1]} : vector<9x32xf32> to vector<1x32xf32>
    %7 = vector.extract_strided_slice %4 {offsets = [2, 0], sizes = [1, 32], strides = [1, 1]} : vector<9x32xf32> to vector<1x32xf32>
    %8 = vector.extract_strided_slice %4 {offsets = [3, 0], sizes = [1, 32], strides = [1, 1]} : vector<9x32xf32> to vector<1x32xf32>
    %9 = vector.extract_strided_slice %4 {offsets = [4, 0], sizes = [1, 32], strides = [1, 1]} : vector<9x32xf32> to vector<1x32xf32>
    %10 = vector.extract_strided_slice %4 {offsets = [5, 0], sizes = [1, 32], strides = [1, 1]} : vector<9x32xf32> to vector<1x32xf32>
    %11 = vector.extract_strided_slice %4 {offsets = [6, 0], sizes = [1, 32], strides = [1, 1]} : vector<9x32xf32> to vector<1x32xf32>
    %12 = vector.extract_strided_slice %4 {offsets = [7, 0], sizes = [1, 32], strides = [1, 1]} : vector<9x32xf32> to vector<1x32xf32>
    %13 = vector.extract_strided_slice %4 {offsets = [8, 0], sizes = [1, 32], strides = [1, 1]} : vector<9x32xf32> to vector<1x32xf32>
    %c0_7 = arith.constant 0 : index
    %c0_8 = arith.constant 0 : index
    %14 = vector.load %arg3[%c0_7, %c0_8] : memref<32x128xf32, #tpu.memory_space<vmem>>, vector<32x128xf32>
    %cst = arith.constant dense<0.000000e+00> : vector<8xf32>
    %15 = vector.multi_reduction <add>, %1, %cst [1] : vector<8x32xf32> to vector<8xf32>
    %16 = vector.shape_cast %15 : vector<8xf32> to vector<8x1xf32>
    %cst_9 = arith.constant 3.200000e+01 : f32
    %17 = vector.broadcast %cst_9 : f32 to vector<8x1xf32>
    %18 = arith.divf %16, %17 : vector<8x1xf32>
    %19 = vector.broadcast %18 : vector<8x1xf32> to vector<8x32xf32>
    %20 = arith.subf %1, %19 : vector<8x32xf32>
    %21 = arith.mulf %20, %20 : vector<8x32xf32>
    %cst_10 = arith.constant dense<0.000000e+00> : vector<8xf32>
    %22 = vector.multi_reduction <add>, %21, %cst_10 [1] : vector<8x32xf32> to vector<8xf32>
    %23 = vector.shape_cast %22 : vector<8xf32> to vector<8x1xf32>
    %cst_11 = arith.constant 3.200000e+01 : f32
    %24 = vector.broadcast %cst_11 : f32 to vector<8x1xf32>
    %25 = arith.divf %23, %24 : vector<8x1xf32>
    %26 = vector.broadcast %18 : vector<8x1xf32> to vector<8x32xf32>
    %27 = arith.subf %1, %26 : vector<8x32xf32>
    %cst_12 = arith.constant 9.99999974E-6 : f32
    %28 = vector.broadcast %cst_12 : f32 to vector<8x1xf32>
    %29 = arith.addf %25, %28 : vector<8x1xf32>
    %30 = math.rsqrt %29 : vector<8x1xf32>
    %31 = vector.broadcast %30 : vector<8x1xf32> to vector<8x32xf32>
    %32 = arith.mulf %27, %31 : vector<8x32xf32>
    %33 = vector.broadcast %5 : vector<1x32xf32> to vector<8x32xf32>
    %34 = arith.mulf %32, %33 : vector<8x32xf32>
    %35 = vector.broadcast %6 : vector<1x32xf32> to vector<8x32xf32>
    %36 = arith.addf %34, %35 : vector<8x32xf32>
    %cst_13 = arith.constant dense<0.000000e+00> : vector<8x128xf32>
    %37 = tpu.matmul %36, %14, %cst_13 {dimension_numbers = #tpu.dot_dimension_numbers<[1], [0], [0], [1], [0, 0, 1, 1], [], []>} : vector<8x32xf32>, vector<32x128xf32>, vector<8x128xf32> -> vector<8x128xf32>
    %38 = vector.extract_strided_slice %37 {offsets = [0, 0], sizes = [1, 32], strides = [1, 1]} : vector<8x128xf32> to vector<1x32xf32>
    %39 = arith.addf %38, %9 : vector<1x32xf32>
    %40 = vector.extract_strided_slice %37 {offsets = [0, 32], sizes = [8, 32], strides = [1, 1]} : vector<8x128xf32> to vector<8x32xf32>
    %41 = vector.broadcast %10 : vector<1x32xf32> to vector<8x32xf32>
    %42 = arith.addf %40, %41 : vector<8x32xf32>
    %43 = vector.extract_strided_slice %37 {offsets = [0, 64], sizes = [8, 32], strides = [1, 1]} : vector<8x128xf32> to vector<8x32xf32>
    %44 = vector.broadcast %11 : vector<1x32xf32> to vector<8x32xf32>
    %45 = arith.addf %43, %44 : vector<8x32xf32>
    %46 = vector.extract_strided_slice %39 {offsets = [0, 0], sizes = [1, 8], strides = [1, 1]} : vector<1x32xf32> to vector<1x8xf32>
    %cst_14 = arith.constant 0.353553385 : f32
    %47 = vector.broadcast %cst_14 : f32 to vector<1x8xf32>
    %48 = arith.mulf %46, %47 : vector<1x8xf32>
    %49 = vector.extract_strided_slice %42 {offsets = [0, 0], sizes = [8, 8], strides = [1, 1]} : vector<8x32xf32> to vector<8x8xf32>
    %50 = vector.extract_strided_slice %45 {offsets = [0, 0], sizes = [8, 8], strides = [1, 1]} : vector<8x32xf32> to vector<8x8xf32>
    %cst_15 = arith.constant dense<0.000000e+00> : vector<1x8xf32>
    %51 = tpu.matmul %48, %49, %cst_15 {dimension_numbers = #tpu.dot_dimension_numbers<[1], [1], [0], [0], [0, 0, 1, 0], [], []>} : vector<1x8xf32>, vector<8x8xf32>, vector<1x8xf32> -> vector<1x8xf32>
    %52 = arith.addf %51, %3 : vector<1x8xf32>
    %cst_16 = arith.constant dense<0xFF800000> : vector<1xf32>
    %53 = vector.multi_reduction <maximumf>, %52, %cst_16 [1] : vector<1x8xf32> to vector<1xf32>
    %54 = vector.shape_cast %53 : vector<1xf32> to vector<1x1xf32>
    %55 = vector.broadcast %54 : vector<1x1xf32> to vector<1x8xf32>
    %56 = arith.subf %52, %55 : vector<1x8xf32>
    %57 = math.exp %56 : vector<1x8xf32>
    %cst_17 = arith.constant dense<0.000000e+00> : vector<1xf32>
    %58 = vector.multi_reduction <add>, %57, %cst_17 [1] : vector<1x8xf32> to vector<1xf32>
    %59 = vector.shape_cast %58 : vector<1xf32> to vector<1x1xf32>
    %60 = vector.broadcast %59 : vector<1x1xf32> to vector<1x8xf32>
    %61 = arith.divf %57, %60 : vector<1x8xf32>
    %cst_18 = arith.constant dense<0.000000e+00> : vector<1x8xf32>
    %62 = tpu.matmul %61, %50, %cst_18 {dimension_numbers = #tpu.dot_dimension_numbers<[1], [0], [0], [1], [0, 0, 1, 1], [], []>} : vector<1x8xf32>, vector<8x8xf32>, vector<1x8xf32> -> vector<1x8xf32>
    %63 = vector.extract_strided_slice %39 {offsets = [0, 8], sizes = [1, 8], strides = [1, 1]} : vector<1x32xf32> to vector<1x8xf32>
    %cst_19 = arith.constant 0.353553385 : f32
    %64 = vector.broadcast %cst_19 : f32 to vector<1x8xf32>
    %65 = arith.mulf %63, %64 : vector<1x8xf32>
    %66 = vector.extract_strided_slice %42 {offsets = [0, 8], sizes = [8, 8], strides = [1, 1]} : vector<8x32xf32> to vector<8x8xf32>
    %67 = vector.extract_strided_slice %45 {offsets = [0, 8], sizes = [8, 8], strides = [1, 1]} : vector<8x32xf32> to vector<8x8xf32>
    %cst_20 = arith.constant dense<0.000000e+00> : vector<1x8xf32>
    %68 = tpu.matmul %65, %66, %cst_20 {dimension_numbers = #tpu.dot_dimension_numbers<[1], [1], [0], [0], [0, 0, 1, 0], [], []>} : vector<1x8xf32>, vector<8x8xf32>, vector<1x8xf32> -> vector<1x8xf32>
    %69 = arith.addf %68, %3 : vector<1x8xf32>
    %cst_21 = arith.constant dense<0xFF800000> : vector<1xf32>
    %70 = vector.multi_reduction <maximumf>, %69, %cst_21 [1] : vector<1x8xf32> to vector<1xf32>
    %71 = vector.shape_cast %70 : vector<1xf32> to vector<1x1xf32>
    %72 = vector.broadcast %71 : vector<1x1xf32> to vector<1x8xf32>
    %73 = arith.subf %69, %72 : vector<1x8xf32>
    %74 = math.exp %73 : vector<1x8xf32>
    %cst_22 = arith.constant dense<0.000000e+00> : vector<1xf32>
    %75 = vector.multi_reduction <add>, %74, %cst_22 [1] : vector<1x8xf32> to vector<1xf32>
    %76 = vector.shape_cast %75 : vector<1xf32> to vector<1x1xf32>
    %77 = vector.broadcast %76 : vector<1x1xf32> to vector<1x8xf32>
    %78 = arith.divf %74, %77 : vector<1x8xf32>
    %cst_23 = arith.constant dense<0.000000e+00> : vector<1x8xf32>
    %79 = tpu.matmul %78, %67, %cst_23 {dimension_numbers = #tpu.dot_dimension_numbers<[1], [0], [0], [1], [0, 0, 1, 1], [], []>} : vector<1x8xf32>, vector<8x8xf32>, vector<1x8xf32> -> vector<1x8xf32>
    %80 = vector.extract_strided_slice %39 {offsets = [0, 16], sizes = [1, 8], strides = [1, 1]} : vector<1x32xf32> to vector<1x8xf32>
    %cst_24 = arith.constant 0.353553385 : f32
    %81 = vector.broadcast %cst_24 : f32 to vector<1x8xf32>
    %82 = arith.mulf %80, %81 : vector<1x8xf32>
    %83 = vector.extract_strided_slice %42 {offsets = [0, 16], sizes = [8, 8], strides = [1, 1]} : vector<8x32xf32> to vector<8x8xf32>
    %84 = vector.extract_strided_slice %45 {offsets = [0, 16], sizes = [8, 8], strides = [1, 1]} : vector<8x32xf32> to vector<8x8xf32>
    %cst_25 = arith.constant dense<0.000000e+00> : vector<1x8xf32>
    %85 = tpu.matmul %82, %83, %cst_25 {dimension_numbers = #tpu.dot_dimension_numbers<[1], [1], [0], [0], [0, 0, 1, 0], [], []>} : vector<1x8xf32>, vector<8x8xf32>, vector<1x8xf32> -> vector<1x8xf32>
    %86 = arith.addf %85, %3 : vector<1x8xf32>
    %cst_26 = arith.constant dense<0xFF800000> : vector<1xf32>
    %87 = vector.multi_reduction <maximumf>, %86, %cst_26 [1] : vector<1x8xf32> to vector<1xf32>
    %88 = vector.shape_cast %87 : vector<1xf32> to vector<1x1xf32>
    %89 = vector.broadcast %88 : vector<1x1xf32> to vector<1x8xf32>
    %90 = arith.subf %86, %89 : vector<1x8xf32>
    %91 = math.exp %90 : vector<1x8xf32>
    %cst_27 = arith.constant dense<0.000000e+00> : vector<1xf32>
    %92 = vector.multi_reduction <add>, %91, %cst_27 [1] : vector<1x8xf32> to vector<1xf32>
    %93 = vector.shape_cast %92 : vector<1xf32> to vector<1x1xf32>
    %94 = vector.broadcast %93 : vector<1x1xf32> to vector<1x8xf32>
    %95 = arith.divf %91, %94 : vector<1x8xf32>
    %cst_28 = arith.constant dense<0.000000e+00> : vector<1x8xf32>
    %96 = tpu.matmul %95, %84, %cst_28 {dimension_numbers = #tpu.dot_dimension_numbers<[1], [0], [0], [1], [0, 0, 1, 1], [], []>} : vector<1x8xf32>, vector<8x8xf32>, vector<1x8xf32> -> vector<1x8xf32>
    %97 = vector.extract_strided_slice %39 {offsets = [0, 24], sizes = [1, 8], strides = [1, 1]} : vector<1x32xf32> to vector<1x8xf32>
    %cst_29 = arith.constant 0.353553385 : f32
    %98 = vector.broadcast %cst_29 : f32 to vector<1x8xf32>
    %99 = arith.mulf %97, %98 : vector<1x8xf32>
    %100 = vector.extract_strided_slice %42 {offsets = [0, 24], sizes = [8, 8], strides = [1, 1]} : vector<8x32xf32> to vector<8x8xf32>
    %101 = vector.extract_strided_slice %45 {offsets = [0, 24], sizes = [8, 8], strides = [1, 1]} : vector<8x32xf32> to vector<8x8xf32>
    %cst_30 = arith.constant dense<0.000000e+00> : vector<1x8xf32>
    %102 = tpu.matmul %99, %100, %cst_30 {dimension_numbers = #tpu.dot_dimension_numbers<[1], [1], [0], [0], [0, 0, 1, 0], [], []>} : vector<1x8xf32>, vector<8x8xf32>, vector<1x8xf32> -> vector<1x8xf32>
    %103 = arith.addf %102, %3 : vector<1x8xf32>
    %cst_31 = arith.constant dense<0xFF800000> : vector<1xf32>
    %104 = vector.multi_reduction <maximumf>, %103, %cst_31 [1] : vector<1x8xf32> to vector<1xf32>
    %105 = vector.shape_cast %104 : vector<1xf32> to vector<1x1xf32>
    %106 = vector.broadcast %105 : vector<1x1xf32> to vector<1x8xf32>
    %107 = arith.subf %103, %106 : vector<1x8xf32>
    %108 = math.exp %107 : vector<1x8xf32>
    %cst_32 = arith.constant dense<0.000000e+00> : vector<1xf32>
    %109 = vector.multi_reduction <add>, %108, %cst_32 [1] : vector<1x8xf32> to vector<1xf32>
    %110 = vector.shape_cast %109 : vector<1xf32> to vector<1x1xf32>
    %111 = vector.broadcast %110 : vector<1x1xf32> to vector<1x8xf32>
    %112 = arith.divf %108, %111 : vector<1x8xf32>
    %cst_33 = arith.constant dense<0.000000e+00> : vector<1x8xf32>
    %113 = tpu.matmul %112, %101, %cst_33 {dimension_numbers = #tpu.dot_dimension_numbers<[1], [0], [0], [1], [0, 0, 1, 1], [], []>} : vector<1x8xf32>, vector<8x8xf32>, vector<1x8xf32> -> vector<1x8xf32>
    %114 = tpu.concatenate %62, %79, %96, %113 in 1 : vector<1x8xf32>, vector<1x8xf32>, vector<1x8xf32>, vector<1x8xf32> -> vector<1x32xf32>
    %115 = vector.extract_strided_slice %14 {offsets = [0, 96], sizes = [32, 32], strides = [1, 1]} : vector<32x128xf32> to vector<32x32xf32>
    %cst_34 = arith.constant dense<0.000000e+00> : vector<1x32xf32>
    %116 = tpu.matmul %114, %115, %cst_34 {dimension_numbers = #tpu.dot_dimension_numbers<[1], [0], [0], [1], [0, 0, 1, 1], [], []>} : vector<1x32xf32>, vector<32x32xf32>, vector<1x32xf32> -> vector<1x32xf32>
    %117 = arith.addf %116, %12 : vector<1x32xf32>
    %118 = vector.extract_strided_slice %1 {offsets = [0, 0], sizes = [1, 32], strides = [1, 1]} : vector<8x32xf32> to vector<1x32xf32>
    %119 = arith.addf %118, %117 : vector<1x32xf32>
    %c0_35 = arith.constant 0 : index
    %c0_36 = arith.constant 0 : index
    %120 = vector.load %arg4[%c0_35, %c0_36] : memref<32x2048xf32, #tpu.memory_space<vmem>>, vector<32x2048xf32>
    %c0_37 = arith.constant 0 : index
    %c0_38 = arith.constant 0 : index
    %121 = vector.load %arg5[%c0_37, %c0_38] : memref<2048x32xf32, #tpu.memory_space<vmem>>, vector<2048x32xf32>
    %cst_39 = arith.constant dense<0.000000e+00> : vector<1xf32>
    %122 = vector.multi_reduction <add>, %119, %cst_39 [1] : vector<1x32xf32> to vector<1xf32>
    %123 = vector.shape_cast %122 : vector<1xf32> to vector<1x1xf32>
    %cst_40 = arith.constant 3.200000e+01 : f32
    %124 = vector.broadcast %cst_40 : f32 to vector<1x1xf32>
    %125 = arith.divf %123, %124 : vector<1x1xf32>
    %126 = vector.broadcast %125 : vector<1x1xf32> to vector<1x32xf32>
    %127 = arith.subf %119, %126 : vector<1x32xf32>
    %128 = arith.mulf %127, %127 : vector<1x32xf32>
    %cst_41 = arith.constant dense<0.000000e+00> : vector<1xf32>
    %129 = vector.multi_reduction <add>, %128, %cst_41 [1] : vector<1x32xf32> to vector<1xf32>
    %130 = vector.shape_cast %129 : vector<1xf32> to vector<1x1xf32>
    %cst_42 = arith.constant 3.200000e+01 : f32
    %131 = vector.broadcast %cst_42 : f32 to vector<1x1xf32>
    %132 = arith.divf %130, %131 : vector<1x1xf32>
    %133 = vector.broadcast %125 : vector<1x1xf32> to vector<1x32xf32>
    %134 = arith.subf %119, %133 : vector<1x32xf32>
    %cst_43 = arith.constant 9.99999974E-6 : f32
    %135 = vector.broadcast %cst_43 : f32 to vector<1x1xf32>
    %136 = arith.addf %132, %135 : vector<1x1xf32>
    %137 = math.rsqrt %136 : vector<1x1xf32>
    %138 = vector.broadcast %137 : vector<1x1xf32> to vector<1x32xf32>
    %139 = arith.mulf %134, %138 : vector<1x32xf32>
    %140 = arith.mulf %139, %7 : vector<1x32xf32>
    %141 = arith.addf %140, %8 : vector<1x32xf32>
    %cst_44 = arith.constant dense<0.000000e+00> : vector<1x2048xf32>
    %142 = tpu.matmul %141, %120, %cst_44 {dimension_numbers = #tpu.dot_dimension_numbers<[1], [0], [0], [1], [0, 0, 1, 1], [], []>} : vector<1x32xf32>, vector<32x2048xf32>, vector<1x2048xf32> -> vector<1x2048xf32>
    %c0_45 = arith.constant 0 : index
    %c0_46 = arith.constant 0 : index
    %143 = vector.load %arg7[%c0_45, %c0_46] : memref<1x2048xf32, #tpu.memory_space<vmem>>, vector<1x2048xf32>
    %144 = arith.addf %142, %143 : vector<1x2048xf32>
    %cst_47 = arith.constant 0.000000e+00 : f32
    %145 = vector.broadcast %cst_47 : f32 to vector<1x2048xf32>
    %146 = arith.maximumf %144, %145 : vector<1x2048xf32>
    %cst_48 = arith.constant dense<0.000000e+00> : vector<1x32xf32>
    %147 = tpu.matmul %146, %121, %cst_48 {dimension_numbers = #tpu.dot_dimension_numbers<[1], [0], [0], [1], [0, 0, 1, 1], [], []>} : vector<1x2048xf32>, vector<2048x32xf32>, vector<1x32xf32> -> vector<1x32xf32>
    %148 = arith.addf %147, %13 : vector<1x32xf32>
    %149 = arith.addf %119, %148 : vector<1x32xf32>
    %c0_49 = arith.constant 0 : index
    %c0_50 = arith.constant 0 : index
    %c0_51 = arith.constant 0 : index
    %150 = vector.load %arg8[%c0_49, %c0_50, %c0_51] : memref<1x1x32xf32, #tpu.memory_space<vmem>>, vector<1x1x32xf32>
    %151 = vector.shape_cast %150 : vector<1x1x32xf32> to vector<1x32xf32>
    %152 = vector.shape_cast %149 : vector<1x32xf32> to vector<1x1x32xf32>
    tpu.vector_store %arg8[%c0_49, %c0_50, %c0_51], %152 {strides = array<i32>} : memref<1x1x32xf32, #tpu.memory_space<vmem>>, vector<1x1x32xf32>,
    return
  }
  func.func @transform_0(%arg0: i32) -> (i32, i32, i32) {
    %c0_i32 = arith.constant 0 : i32
    %c0_i32_0 = arith.constant 0 : i32
    %c0_i32_1 = arith.constant 0 : i32
    return %arg0, %c0_i32, %c0_i32_0 : i32, i32, i32
  }
  func.func @transform_1(%arg0: i32) -> (i32, i32, i32) {
    %c0_i32 = arith.constant 0 : i32
    %c0_i32_0 = arith.constant 0 : i32
    %c0_i32_1 = arith.constant 0 : i32
    return %arg0, %c0_i32, %c0_i32_0 : i32, i32, i32
  }
  func.func @transform_2(%arg0: i32) -> (i32, i32) {
    %c0_i32 = arith.constant 0 : i32
    %c0_i32_0 = arith.constant 0 : i32
    %c0_i32_1 = arith.constant 0 : i32
    return %c0_i32, %c0_i32_0 : i32, i32
  }
  func.func @transform_3(%arg0: i32) -> (i32, i32) {
    %c0_i32 = arith.constant 0 : i32
    %c0_i32_0 = arith.constant 0 : i32
    %c0_i32_1 = arith.constant 0 : i32
    return %c0_i32, %c0_i32_0 : i32, i32
  }
  func.func @transform_4(%arg0: i32) -> (i32, i32) {
    %c0_i32 = arith.constant 0 : i32
    %c0_i32_0 = arith.constant 0 : i32
    %c0_i32_1 = arith.constant 0 : i32
    return %c0_i32, %c0_i32_0 : i32, i32
  }
  func.func @transform_5(%arg0: i32) -> (i32, i32) {
    %c0_i32 = arith.constant 0 : i32
    %c0_i32_0 = arith.constant 0 : i32
    %c0_i32_1 = arith.constant 0 : i32
    return %c0_i32, %c0_i32_0 : i32, i32
  }
  func.func @transform_6(%arg0: i32) -> (i32, i32) {
    %c0_i32 = arith.constant 0 : i32
    %c0_i32_0 = arith.constant 0 : i32
    %c0_i32_1 = arith.constant 0 : i32
    return %c0_i32, %c0_i32_0 : i32, i32
  }
  func.func @transform_7(%arg0: i32) -> (i32, i32, i32) {
    %c0_i32 = arith.constant 0 : i32
    %c0_i32_0 = arith.constant 0 : i32
    %c0_i32_1 = arith.constant 0 : i32
    return %arg0, %c0_i32, %c0_i32_0 : i32, i32, i32
  }
}

</mosaic_0001>

<bundles_post_ra>
// kernel: tpu_custom_call.1
= control target key start
LH: loop header
LB: loop body
LE: loop exit
PB: predicated region body
PF: predicated region fallthrough
CT: control target
= control target key end

     0   :  { %12 = vsyncpa [#allocation3], 0  ;;  %s4743_s0 = inlined_call_operand.vmem [shape: f32[4,8,32], index: 0, kind: input, shape index: {}]   ;;  %s4744_s1 = inlined_call_operand.vmem [shape: f32[4,1,8], index: 1, kind: input, shape index: {}]   ;;  %s4745_s2 = inlined_call_operand.vmem [shape: f32[32,128], index: 2, kind: input, shape index: {}]   ;;  %s4746_s3 = inlined_call_operand.vmem [shape: f32[32,2048], index: 3, kind: input, shape index: {}]   ;;  %s4747_s4 = inlined_call_operand.vmem [shape: f32[2048,32], index: 4, kind: input, shape index: {}]   ;;  %s4748_s5 = inlined_call_operand.vmem [shape: f32[9,32], index: 5, kind: input, shape index: {}]   ;;  %s4749_s6 = inlined_call_operand.vmem [shape: f32[1,2048], index: 6, kind: input, shape index: {}]   ;;  %s4750_s7 = inlined_call_operand.hbm [shape: f32[4,1,32], index: 7, kind: output, shape index: {}]  }
   0x1   :  { %14 = vsyncpa [#allocation3 + $0x1], 0  ;;  %s3432_s24 = smov 0   ;;  %s3434_s25 = smov 0  }
   0x2   :  { %s3436_s26 = smov 0   ;;  %s3438_s27 = smov 0  }
   0x3 LB: > { %s3453_s28 = sadd.s32 4294967295, %s3372_s27   ;;  %s2838_s29 = sadd.s32 4294967294, %s3372_s27   ;;  %s3372_s27 = sphi %s3438_s27, %s4756_s27   ;;  %s3368_s26 = sphi %s3436_s26, %s4755_s26   ;;  %s3364_s25 = sphi %s3434_s25, %s4754_s25   ;;  %s3360_s24 = sphi %s3432_s24, %s4753_s24  }
   0x4   : > { %s3457_s30 = sadd.s32 1, %s3372_s27   ;;  %s184_s8 = sadd.s32 1, %s3368_s26 }
   0x5   : > { %s181_s9 = ssub.s32 %s3372_s27, %s3457_s30  ;;  %p194_p0 = scmp.ne.s32.totalorder %s3368_s26, %s3364_s25 }
   0x6   : > { %p182_p1 = scmp.eq.s32.totalorder %s181_s9, 0  ;;  %p195_p2 = scmp.eq.s32.totalorder %s3453_s28, 3 }
   0x7   : > { %p200_p3 = scmp.ne.s32.totalorder %s3364_s25, %s3360_s24  ;;  %p201_p4 = scmp.eq.s32.totalorder %s2838_s29, 3 }
   0x8   : > { %s3468_s10 = scalar_select %p182_p1, %s3368_s26, %s184_s8  }
   0x9   : > { %p3470_p5 = por %p195_p2, %p194_p0  ;;  %p3474_p6 = por %p201_p4, %p200_p3 }
   0xa   : > { %p2841_p7 = scmp.ge.s32.totalorder %s3372_s27, 1  ;;  %p247_p8 = scmp.lt.s32.totalorder %s3372_s27, 5 }
   0xc   : > { %p248_p9 = pnand %p2841_p7, %p247_p8 }
   0xd   : > { %p280_p10 = scmp.lt.s32.totalorder (!%p248_p9), %s3453_s28, 3  ;;  %s3376_s15 = smov (!%p248_p9), 32  }
   0xe   : > { %251 = sbr.rel (%p248_p9) target bundleno = 3002 (0xbba), region = 48  ;;  %s3377_s16 = smov (!%p248_p9), 96  }
   0xf   : > { %s3379_s18 = smov (!%p248_p9), 120   ;;  %s3380_s19 = smov (!%p248_p9), 80  }
  0x10   : > { %s3381_s20 = smov (!%p248_p9), 112   ;;  %s3382_s21 = smov (!%p248_p9), 72  }
  0x11   : > { %s3383_s22 = smov (!%p248_p9), 104   ;;  %s3385_s9 = smov (!%p248_p9), 56  }
  0x13   : > { %s3482_s13 = scalar_select %p280_p10, %s3453_s28, 3  ;;  %vm295_vm0 = vcmask 261120   ;;  %v3497_v7 = vld [vmem:[%s4745_s2 + $0x18] sm:$0xff]  ;;  %v3374_v8 = vmov 0.0   ;;  %v3503_v9 = vld [vmem:[%s4745_s2 + $0x10] sm:$0xff]  ;;  %vm3375_vm1 = vmmov 0   ;;  %v310_v12 = vlaneseq }
  0x14   : > { %3174 = vmatprep.subr.mxu0 %v3374_v8  ;;  %3182 = vmatprep.mubr.msk.f32.mxu0 %vm3375_vm1, %v3374_v8  ;;  %v3513_v10 = vld [vmem:[%s4745_s2 + $0x8] sm:$0xff]  ;;  %v3522_v11 = vld [vmem:[%s4745_s2] sm:$0xff]  ;;  %vm419_vm2 = vcmask 64512   ;;  %vm495_vm3 = vcmask 57344   ;;  %vm1092_vm4 = vcmask 130048   ;;  %vm1094_vm5 = vcmask 195584  }
  0x15   : > { %s2842_s14 = sshll.u32 %s3482_s13, 3  ;;  %3175 = vmatpush3.msra.mxu0 %v3497_v7  ;;  %3185 = vmatprep.subr.mxu1 %v3374_v8  ;;  %v3528_v13 = vshrl.u32 %v310_v12, 7  ;;  %v3536_v15 = vld [vmem:[%s4748_s5] sm:$0xff]  ;;  %s286_s8 = scalar_lea.vmem %s4744_s1, %s3482_s13  ;;  %vm1508_vm6 = vcmask 253952  }
  0x16   : > { %s283_s17 = scalar_lea.vmem %s4743_s0, %s2842_s14  ;;  %3176 = vmatprep.subr.mxu0 %v3374_v8  ;;  %3187 = vmatprep.mubr.msk.f32.mxu1 %vm3375_vm1, %v3374_v8  ;;  %v394_v34 = vrot.slane %v3536_v15, 4  ;;  %v288_v46 = vld [vmem:[%s286_s8] sm:$0x1]  ;;  %s3384_s13 = smov 88  }
  0x17   : > { %v3488_v0 = vld [vmem:[%s283_s17] sm:$0xff]  ;;  %3177 = vmatpush3.msra.mxu0 %v3503_v9  ;;  %v3531_v14 = vsub.s32 5, %v3528_v13  ;;  %v3542_v20 = vsub.s32 0, %v3528_v13  ;;  %v3545_v21 = vsub.s32 1, %v3528_v13  ;;  %v3555_v29 = vsub.s32 6, %v3528_v13  ;;  %s3378_s17 = smov 64  }
  0x18   : > { %v296_v1 = vsel %vm295_vm0, %v3488_v0, 0.0  ;;  %3178 = vmatprep.subr.mxu0 %v3374_v8  ;;  %s3386_s14 = smov 48  }
  0x19   : > { %297 = vadd.xlane.f32.xlu0 %v296_v1  ;;  %3179 = vmatpush3.msra.mxu0 %v3513_v10  ;;  %v400_v16 = vrot.slane %v3536_v15, %v3531_v14  ;;  %v313_v22 = vrot.slane %v3536_v15, %v3542_v20  ;;  %v318_v25 = vrot.slane %v3536_v15, %v3545_v21 }
  0x1a   : > { %3180 = vmatprep.subr.mxu0 %v3374_v8  ;;  %v409_v33 = vrot.slane %v3536_v15, %v3555_v29 }
  0x1b   : > { %3181 = vmatpush3.msra.mxu0 %v3522_v11  ;;  %402 = vrot.lane.b32.xlu1 %v400_v16, %s3376_s15 }
  0x1c   : > { %3205 = vmatprep.subr.mxu0 %v3374_v8 }
  0x8d   : > { %v403_v28 = vpop.permute.xlu1 %402 }
  0xa2   : > { %v298_v2 = vpop.xlane.xlu0 %297 }
  0xa3   : > { %v300_v3 = vmul.f32 0.03125, %v298_v2 }
  0xa5   : > { %v301_v4 = vsub.f32 %v3488_v0, %v300_v3 }
  0xa7   : > { %v302_v5 = vmul.f32 %v301_v4, %v301_v4 }
  0xa9   : > { %v303_v6 = vsel %vm295_vm0, %v302_v5, 0.0 }
  0xaa   : > { %304 = vadd.xlane.f32.xlu0 %v303_v6 }
 0x133   : > { %v305_v17 = vpop.xlane.xlu0 %304 }
 0x134   : > { %v306_v18 = vmul.f32 0.03125, %v305_v17 }
 0x136   : > { %v307_v19 = vadd.f32 1e-05, %v306_v18 }
 0x138   : > { %3292 = vrsqrt.f32 %v307_v19 }
 0x145   : > { %v3293_v23 = vpop.eup %3292 }
 0x146   : > { %v309_v24 = vmul.f32 %v3293_v23, %v301_v4 }
 0x148   : > { %v314_v26 = vmul.f32 %v313_v22, %v309_v24 }
 0x14a   : > { %v319_v27 = vadd.f32 %v318_v25, %v314_v26 }
 0x14c   : > { %3183 = vmatmul.mubr.msk.f32.vlgmr.msra.gmra.mxu0 %vm295_vm0, %v319_v27 }
 0x14d   : > { %3207 = vmatprep.mubr.msk.f32.mxu0 %vm3375_vm1, %v3374_v8 }
 0x20c   : > { %v389_v30 = vpop.f32.mrf.mxu0 }
 0x20d   : > { %v3557_v31 = vadd.f32 %v403_v28, %v389_v30  ;;  %v396_v35 = vadd.f32 %v394_v34, %v389_v30 }
 0x20e   : > { %v3184_v32 = vpop.f32.mrf.mxu0 }
 0x20f   : > { %417 = vrot.lane.b32.xlu1 %v3557_v31, %s3377_s16  ;;  %v415_v37 = vmul.f32 0.35355338, %v396_v35  ;;  %s3387_s16 = smov 40  }
 0x213   : > { %411 = vrot.lane.b32.xlu1 %v409_v33, %s3378_s17 }
 0x281   : > { %v418_v36 = vpop.permute.xlu1 %417 }
 0x282   : > { %3186 = vmatpush3.xpose.msk.msra.mxu1 %vm419_vm2, %v418_v36 }
 0x283   : > { %3190 = vmatprep.subr.mxu1 %v3374_v8 }
 0x285   : > { %v412_v38 = vpop.permute.xlu1 %411  ;;  %3188 = vmatmul.mubr.msk.f32.vlgmr.msra.gmra.mxu1 %vm419_vm2, %v415_v37 }
 0x286   : > { %v3566_v39 = vadd.f32 %v412_v38, %v389_v30  ;;  %3192 = vmatprep.mubr.msk.f32.mxu1 %vm3375_vm1, %v3374_v8 }
 0x288   : > { %508 = vrot.lane.b32.xlu1 %v3566_v39, %s3378_s17  ;;  %s3388_s17 = smov 8  }
 0x28c   : > { %584 = vrot.lane.b32.xlu1 %v415_v37, %s3379_s18  ;;  %s3389_s18 = smov 16  }
 0x290   : > { %751 = vrot.lane.b32.xlu1 %v3557_v31, %s3380_s19  ;;  %s3390_s19 = smov 24  }
 0x294   : > { %749 = vrot.lane.b32.xlu1 %v415_v37, %s3381_s20 }
 0x298   : > { %916 = vrot.lane.b32.xlu1 %v3557_v31, %s3382_s21  ;;  %s278_s21 = sand.u32 1, %s3364_s25  }
 0x299   : > { %s279_s23 = scalar_lea.vmem [#allocation2], %s278_s21 }
 0x29a   : > { %s2774_s29 = sshll.u32 %s279_s23, 4  ;;  %s2775_s29 = int_to_ptr.vmem [resolvable:$true] %s2774_s29 }
 0x29c   : > { %914 = vrot.lane.b32.xlu1 %v415_v37, %s3383_s22  ;;  %s2865_s22 = sshll.u32 %s3453_s28, 4 }
 0x2fa   : > { %v509_v40 = vpop.permute.xlu1 %508 }
 0x2fb   : > { %3191 = vmatpush3.msra.mxu1 %v509_v40 }
 0x2fc   : > { %3195 = vmatprep.subr.mxu1 %v3374_v8 }
 0x2fe   : > { %v585_v41 = vpop.permute.xlu1 %584 }
 0x302   : > { %v752_v42 = vpop.permute.xlu1 %751 }
 0x303   : > { %3206 = vmatpush3.xpose.msk.msra.mxu0 %vm419_vm2, %v752_v42 }
 0x304   : > { %3215 = vmatprep.subr.mxu0 %v3374_v8 }
 0x306   : > { %v750_v43 = vpop.permute.xlu1 %749 }
 0x307   : > { %3208 = vmatmul.mubr.msk.f32.vlgmr.msra.gmra.mxu0 %vm419_vm2, %v750_v43 }
 0x308   : > { %3217 = vmatprep.mubr.msk.f32.mxu0 %vm3375_vm1, %v3374_v8 }
 0x30a   : > { %v917_v44 = vpop.permute.xlu1 %916 }
 0x30b   : > { %3216 = vmatpush3.xpose.msk.msra.mxu0 %vm419_vm2, %v917_v44 }
 0x30c   : > { %3225 = vmatprep.subr.mxu0 %v3374_v8 }
 0x30e   : > { %v915_v45 = vpop.permute.xlu1 %914 }
 0x30f   : > { %3218 = vmatmul.mubr.msk.f32.vlgmr.msra.gmra.mxu0 %vm419_vm2, %v915_v45 }
 0x310   : > { %3233 = vmatprep.mubr.msk.f32.mxu0 %vm3375_vm1, %v3374_v8 }
 0x345   : > { %v491_v47 = vpop.f32.mrf.mxu1 }
 0x346   : > { %v492_v48 = vadd.f32 %v491_v47, %v288_v46 }
 0x347   : > { %v3189_v49 = vpop.f32.mrf.mxu1 }
 0x348   : > { %v496_v50 = vsel %vm495_vm3, %v492_v48, -inf }
 0x349   : > { %497 = vmax.xlane.f32.xlu0 %v496_v50 }
 0x3c7   : > { %v823_v51 = vpop.f32.mrf.mxu0 }
 0x3c8   : > { %v824_v60 = vadd.f32 %v823_v51, %v288_v46 }
 0x3c9   : > { %v3209_v52 = vpop.f32.mrf.mxu0 }
 0x3ca   : > { %v827_v62 = vsel %vm495_vm3, %v824_v60, -inf }
 0x3cf   : > { %v988_v53 = vpop.f32.mrf.mxu0 }
 0x3d0   : > { %v989_v61 = vadd.f32 %v988_v53, %v288_v46 }
 0x3d1   : > { %v3219_v54 = vpop.f32.mrf.mxu0 }
 0x3d2   : > { %v498_v55 = vpop.xlane.xlu0 %497  ;;  %v992_v63 = vsel %vm495_vm3, %v989_v61, -inf }
 0x3d3   : > { %v499_v56 = vsub.f32 %v492_v48, %v498_v55 }
 0x3d5   : > { %v500_v57 = vmul.f32 1.442695, %v499_v56 }
 0x3d7   : > { %3294 = vpow2.f32 %v500_v57 }
 0x3e4   : > { %v3295_v58 = vpop.eup %3294 }
 0x3e5   : > { %v502_v59 = vsel %vm495_vm3, %v3295_v58, 0.0 }
 0x3e6   : > { %503 = vadd.xlane.f32.xlu0 %v502_v59 }
 0x3fc   : > { %586 = vrot.lane.b32.xlu0 %v3557_v31, %s3384_s13 }
 0x41b   : > { %828 = vmax.xlane.f32.xlu0 %v827_v62 }
 0x41f   : > { %993 = vmax.xlane.f32.xlu0 %v992_v63 }
 0x46f   : > { %v504_v1 = vpop.xlane.xlu0 %503 }
 0x470   : > { %3296 = vrcp.f32 %v504_v1 }
 0x473   : > { %v587_v4 = vpop.permute.xlu0 %586 }
 0x47d   : > { %v3297_v2 = vpop.eup %3296 }
 0x47e   : > { %v506_v3 = vmul.f32 %v3297_v2, %v3295_v58 }
 0x480   : > { %3193 = vmatmul.mubr.msk.f32.vlgmr.msra.gmra.mxu1 %vm419_vm2, %v506_v3 }
 0x481   : > { %3196 = vmatpush3.xpose.msk.msra.mxu1 %vm419_vm2, %v587_v4  ;;  %3197 = vmatprep.mubr.msk.f32.mxu1 %vm3375_vm1, %v3374_v8 }
 0x482   : > { %3200 = vmatprep.subr.mxu1 %v3374_v8 }
 0x484   : > { %3198 = vmatmul.mubr.msk.f32.vlgmr.msra.gmra.mxu1 %vm419_vm2, %v585_v41 }
 0x485   : > { %3202 = vmatprep.mubr.msk.f32.mxu1 %vm3375_vm1, %v3374_v8 }
 0x4a4   : > { %v829_v5 = vpop.xlane.xlu0 %828 }
 0x4a5   : > { %v830_v6 = vsub.f32 %v824_v60, %v829_v5 }
 0x4a7   : > { %v831_v12 = vmul.f32 1.442695, %v830_v6 }
 0x4a8   : > { %v994_v18 = vpop.xlane.xlu0 %993 }
 0x4a9   : > { %3298 = vpow2.f32 %v831_v12  ;;  %v995_v19 = vsub.f32 %v989_v61, %v994_v18  ;;  %v1236_v18 = vld [vmem:[%s4746_s3 + $0x180] sm:$0xff] }
 0x4ab   : > { %v996_v22 = vmul.f32 1.442695, %v995_v19  ;;  %v1238_v19 = vld [vmem:[%s4746_s3 + $0x190] sm:$0xff] }
 0x4ad   : > { %3300 = vpow2.f32 %v996_v22  ;;  %v1221_v22 = vld [vmem:[%s4746_s3 + $0x108] sm:$0xff] }
 0x4b6   : > { %v3299_v16 = vpop.eup %3298 }
 0x4b7   : > { %v833_v17 = vsel %vm495_vm3, %v3299_v16, 0.0 }
 0x4b8   : > { %834 = vadd.xlane.f32.xlu0 %v833_v17  ;;  %v1237_v17 = vld [vmem:[%s4746_s3 + $0x188] sm:$0xff] }
 0x4ba   : > { %v3301_v32 = vpop.eup %3300 }
 0x4ce   : > { %673 = vrot.lane.b32.xlu0 %v3566_v39, %s3385_s9  ;;  %s2772_s9 = scalar_lea.hbm %s4750_s7, %s2865_s22 }
 0x4d2   : > { %1106 = vrot.lane.b32.xlu0 %v3497_v7, %s3376_s15  ;;  %v998_v7 = vsel %vm495_vm3, %v3301_v32, 0.0 }
 0x540   : > { %v3605_v23 = vpop.f32.mrf.mxu1 }
 0x541   : > { %v835_v24 = vpop.xlane.xlu0 %834 }
 0x542   : > { %v3194_v25 = vpop.f32.mrf.mxu1 }
 0x543   : > { %v1222_v25 = vld [vmem:[%s4746_s3 + $0x110] sm:$0xff] }
 0x544   : > { %v658_v26 = vpop.f32.mrf.mxu1 }
 0x545   : > { %v659_v27 = vadd.f32 %v658_v26, %v288_v46  ;;  %v674_v28 = vpop.permute.xlu0 %673  ;;  %v1205_v26 = vld [vmem:[%s4746_s3 + $0x88] sm:$0xff] }
 0x546   : > { %v3199_v30 = vpop.f32.mrf.mxu1  ;;  %3201 = vmatpush3.msra.mxu1 %v674_v28  ;;  %v1204_v28 = vld [vmem:[%s4746_s3 + $0x80] sm:$0xff] }
 0x547   : > { %v662_v31 = vsel %vm495_vm3, %v659_v27, -inf  ;;  %3210 = vmatprep.subr.mxu1 %v3374_v8  ;;  %v1206_v30 = vld [vmem:[%s4746_s3 + $0x90] sm:$0xff] }
 0x548   : > { %663 = vmax.xlane.f32.xlu1 %v662_v31  ;;  %v1189_v31 = vld [vmem:[%s4746_s3 + $0x8] sm:$0xff] }
 0x549   : > { %v1107_v46 = vpop.permute.xlu0 %1106 }
 0x54a   : > { %3226 = vmatpush3.msra.mxu0 %v1107_v46  ;;  %v1224_v46 = vld [vmem:[%s4746_s3 + $0x120] sm:$0xff] }
 0x54b   : > { %3227 = vmatprep.subr.mxu0 %v3374_v8 }
 0x54c   : > { %999 = vadd.xlane.f32.xlu1 %v998_v7  ;;  %v1188_v7 = vld [vmem:[%s4746_s3] sm:$0xff] }
 0x55d   : > { %838 = vrot.lane.b32.xlu1 %v3566_v39, %s3386_s14  ;;  %s2762_s14 = scalar_lea.sflag [#allocation3], %s278_s21 }
 0x5d1   : > { %v664_v33 = vpop.xlane.xlu1 %663 }
 0x5d2   : > { %v665_v34 = vsub.f32 %v659_v27, %v664_v33  ;;  %v1207_v27 = vld [vmem:[%s4746_s3 + $0x98] sm:$0xff]  ;;  %v1190_v33 = vld [vmem:[%s4746_s3 + $0x10] sm:$0xff] }
 0x5d4   : > { %v666_v35 = vmul.f32 1.442695, %v665_v34  ;;  %v1241_v34 = vld [vmem:[%s4746_s3 + $0x1a8] sm:$0xff] }
 0x5d5   : > { %v1000_v38 = vpop.xlane.xlu1 %999 }
 0x5d6   : > { %3302 = vpow2.f32 %v666_v35  ;;  %v1243_v35 = vld [vmem:[%s4746_s3 + $0x1b8] sm:$0xff] }
 0x5d9   : > { %v839_v40 = vpop.permute.xlu1 %838 }
 0x5e3   : > { %v3303_v36 = vpop.eup %3302 }
 0x5e4   : > { %v668_v37 = vsel %vm495_vm3, %v3303_v36, 0.0 }
 0x5e5   : > { %669 = vadd.xlane.f32.xlu1 %v668_v37 }
 0x5f6   : > { %1003 = vrot.lane.b32.xlu1 %v3566_v39, %s3387_s16  ;;  %s3312_s16 = scalar_lea.vmem %s2775_s29, 16 }
 0x5f7   : > { %p3313_p11 = scmp.ne.s32.totalorder %s2775_s29, %s3312_s16 }
 0x5f9   : > { %p3314_p12 = pnand %p3313_p11, %p3470_p5 }
 0x5fa   : > { %1104 = vrot.lane.b32.xlu1 %v3503_v9, %s3376_s15 }
 0x5fb   : > { %p3315_p13 = pneg %p3314_p12 }
 0x5fe   : > { %1102 = vrot.lane.b32.xlu1 %v3513_v10, %s3376_s15 }
 0x66e   : > { %v670_v41 = vpop.xlane.xlu1 %669 }
 0x66f   : > { %3304 = vrcp.f32 %v670_v41 }
 0x670   : > { %3306 = vrcp.f32 %v835_v24  ;;  %v1220_v24 = vld [vmem:[%s4746_s3 + $0x100] sm:$0xff] }
 0x671   : > { %3308 = vrcp.f32 %v1000_v38 }
 0x672   : > { %v1004_v10 = vpop.permute.xlu1 %1003 }
 0x676   : > { %v1105_v47 = vpop.permute.xlu1 %1104 }
 0x677   : > { %3228 = vmatpush3.msra.mxu0 %v1105_v47  ;;  %v1226_v47 = vld [vmem:[%s4746_s3 + $0x130] sm:$0xff] }
 0x678   : > { %3229 = vmatprep.subr.mxu0 %v3374_v8 }
 0x67a   : > { %v1103_v48 = vpop.permute.xlu1 %1102 }
 0x67b   : > { %3230 = vmatpush3.msra.mxu0 %v1103_v48  ;;  %v1209_v48 = vld [vmem:[%s4746_s3 + $0xa8] sm:$0xff] }
 0x67c   : > { %v3305_v42 = vpop.eup %3304  ;;  %3231 = vmatprep.subr.mxu0 %v3374_v8 }
 0x67d   : > { %v672_v43 = vmul.f32 %v3305_v42, %v3303_v36  ;;  %v3307_v44 = vpop.eup %3306  ;;  %v1525_v42 = vrot.slane %v3536_v15, 3 }
 0x67e   : > { %v837_v9 = vmul.f32 %v3307_v44, %v3299_v16  ;;  %v3309_v39 = vpop.eup %3308 }
 0x67f   : > { %3203 = vmatmul.mubr.msk.f32.vlgmr.msra.gmra.mxu1 %vm419_vm2, %v672_v43  ;;  %v1002_v45 = vmul.f32 %v3309_v39, %v3301_v32  ;;  %v1191_v32 = vld [vmem:[%s4746_s3 + $0x18] sm:$0xff]  ;;  %v1240_v39 = vld [vmem:[%s4746_s3 + $0x1a0] sm:$0xff] }
 0x680   : > { %3211 = vmatpush3.msra.mxu1 %v839_v40  ;;  %3212 = vmatprep.mubr.msk.f32.mxu1 %vm3375_vm1, %v3374_v8  ;;  %v1522_v40 = vrot.slane %v3536_v15, 2 }
 0x681   : > { %3220 = vmatprep.subr.mxu1 %v3374_v8 }
 0x683   : > { %3213 = vmatmul.mubr.msk.f32.vlgmr.msra.gmra.mxu1 %vm419_vm2, %v837_v9 }
 0x684   : > { %3221 = vmatpush3.msra.mxu1 %v1004_v10  ;;  %3222 = vmatprep.mubr.msk.f32.mxu1 %vm3375_vm1, %v3374_v8  ;;  %v1242_v10 = vld [vmem:[%s4746_s3 + $0x1b0] sm:$0xff] }
 0x685   : > { %1639 = vmatprep.subr.mxu1 %v1237_v17  ;;  %v1249_v17 = vld [vmem:[%s4746_s3 + $0x1e8] sm:$0xff] }
 0x687   : > { %3223 = vmatmul.mubr.msk.f32.vlgmr.msra.gmra.mxu1 %vm419_vm2, %v1002_v45  ;;  %v1225_v45 = vld [vmem:[%s4746_s3 + $0x128] sm:$0xff] }
 0x688   : > { %1679 = vmatprep.mubr.f32.mxu1 %v3374_v8  ;;  %1640 = vmatpush1.msra.mxu1 %v1236_v18  ;;  %v1248_v18 = vld [vmem:[%s4746_s3 + $0x1e0] sm:$0xff] }
 0x689   : > { %1641 = vmatprep.subr.mxu1 %v1221_v22  ;;  %v1233_v22 = vld [vmem:[%s4746_s3 + $0x168] sm:$0xff] }
 0x68a   : > { %1642 = vmatpush1.msra.mxu1 %v1220_v24  ;;  %v1232_v24 = vld [vmem:[%s4746_s3 + $0x160] sm:$0xff] }
 0x68b   : > { %1643 = vmatprep.subr.mxu1 %v1205_v26  ;;  %v1217_v26 = vld [vmem:[%s4746_s3 + $0xe8] sm:$0xff] }
 0x68c   : > { %1644 = vmatpush1.msra.mxu1 %v1204_v28  ;;  %v1216_v28 = vld [vmem:[%s4746_s3 + $0xe0] sm:$0xff] }
 0x68d   : > { %1645 = vmatprep.subr.mxu1 %v1189_v31  ;;  %v1201_v31 = vld [vmem:[%s4746_s3 + $0x68] sm:$0xff] }
 0x68e   : > { %1646 = vmatpush1.msra.mxu1 %v1188_v7  ;;  %v1200_v7 = vld [vmem:[%s4746_s3 + $0x60] sm:$0xff] }
 0x68f   : > { %1781 = vmatprep.subr.mxu1 %v1241_v34  ;;  %v1283_v34 = vld [vmem:[%s4747_s4 + $0xf8] sm:$0xff] }
 0x73f   : > { %v745_v49 = vpop.f32.mrf.mxu1 }
 0x740   : > { %1080 = vrot.lane.b32.xlu0 %v745_v49, %s3388_s17  ;;  %v1211_v49 = vld [vmem:[%s4746_s3 + $0xb8] sm:$0xff]  ;;  %s3391_s17 = smov [#allocation2]  }
 0x741   : > { %v3204_v50 = vpop.f32.mrf.mxu1  ;;  %s3316_s28 = sshll.u32 %s3391_s17, 4  ;;  %s3317_s28 = int_to_ptr.vmem [resolvable:$false] %s3316_s28 }
 0x742   : > { %v1208_v50 = vld [vmem:[%s4746_s3 + $0xa0] sm:$0xff]  ;;  %p3319_p0 = scmp.lt.s32.totalorder %s2775_s29, %s3317_s28 }
 0x743   : > { %v910_v51 = vpop.f32.mrf.mxu1 }
 0x744   : > { %1084 = vrot.lane.b32.xlu0 %v910_v51, %s3389_s18  ;;  %v1210_v51 = vld [vmem:[%s4746_s3 + $0xb0] sm:$0xff]  ;;  %s3318_s18 = scalar_lea.vmem %s3317_s28, 32 }
 0x745   : > { %v3214_v52 = vpop.f32.mrf.mxu1  ;;  %p3320_p1 = scmp.lt.s32.totalorder %s3318_s18, %s3312_s16 }
 0x746   : > { %v1193_v52 = vld [vmem:[%s4746_s3 + $0x28] sm:$0xff] }
 0x747   : > { %v1075_v53 = vpop.f32.mrf.mxu1  ;;  %p3321_p2 = por %p3320_p1, %p3319_p0 }
 0x748   : > { %1100 = vrot.lane.b32.xlu0 %v3522_v11, %s3376_s15  ;;  %1088 = vrot.lane.b32.xlu1 %v1075_v53, %s3390_s19  ;;  %v1112_v11 = vrot.slane %v3536_v15, 7  ;;  %v1227_v15 = vld [vmem:[%s4746_s3 + $0x138] sm:$0xff] }
 0x749   : > { %v3224_v54 = vpop.f32.mrf.mxu1  ;;  %v1195_v53 = vld [vmem:[%s4746_s3 + $0x38] sm:$0xff]  ;;  %p3322_p3 = pnand %p3321_p2, %p3315_p13 }
 0x74a   : > { %v1192_v54 = vld [vmem:[%s4746_s3 + $0x20] sm:$0xff] }
 0x7b2   : > { %v1081_v55 = vpop.permute.xlu0 %1080 }
 0x7b3   : > { %v1091_v57 = vsel %vm419_vm2, %v3605_v23, %v1081_v55  ;;  %v1223_v23 = vld [vmem:[%s4746_s3 + $0x118] sm:$0xff]  ;;  %v1194_v55 = vld [vmem:[%s4746_s3 + $0x30] sm:$0xff] }
 0x7b6   : > { %v1085_v56 = vpop.permute.xlu0 %1084 }
 0x7b7   : > { %v1093_v58 = vsel %vm1092_vm4, %v1091_v57, %v1085_v56  ;;  %v1245_v56 = vld [vmem:[%s4746_s3 + $0x1c8] sm:$0xff]  ;;  %v1247_v57 = vld [vmem:[%s4746_s3 + $0x1d8] sm:$0xff] }
 0x7ba   : > { %v1089_v59 = vpop.permute.xlu1 %1088  ;;  %v1101_v60 = vpop.permute.xlu0 %1100 }
 0x7bb   : > { %v1095_v61 = vsel %vm1094_vm5, %v1093_v58, %v1089_v59  ;;  %3232 = vmatpush3.msra.mxu0 %v1101_v60  ;;  %v1244_v58 = vld [vmem:[%s4746_s3 + $0x1c0] sm:$0xff]  ;;  %v1246_v59 = vld [vmem:[%s4746_s3 + $0x1d0] sm:$0xff]  ;;  %v1229_v60 = vld [vmem:[%s4746_s3 + $0x148] sm:$0xff] }
 0x7bc   : > { %3234 = vmatmul.mubr.msk.f32.vlgmr.msra.gmra.mxu0 %vm295_vm0, %v1095_v61  ;;  %v1231_v61 = vld [vmem:[%s4746_s3 + $0x158] sm:$0xff] }
 0x7bd   : > { %1750 = vmatprep.mubr.f32.mxu0 %v3374_v8 }
 0x87c   : > { %v1183_v62 = vpop.f32.mrf.mxu0 }
 0x87d   : > { %v1184_v63 = vadd.f32 %v1183_v62, %v1112_v11  ;;  %v1228_v11 = vld [vmem:[%s4746_s3 + $0x140] sm:$0xff]  ;;  %v1230_v62 = vld [vmem:[%s4746_s3 + $0x150] sm:$0xff] }
 0x87e   : > { %v3235_v1 = vpop.f32.mrf.mxu0 }
 0x87f   : > { %v3637_v2 = vadd.f32 %v1184_v63, %v3488_v0  ;;  %v1239_v0 = vld [vmem:[%s4746_s3 + $0x198] sm:$0xff]  ;;  %v1213_v63 = vld [vmem:[%s4746_s3 + $0xc8] sm:$0xff] }
 0x880   : > { %1710 = vmatprep.subr.mxu0 %v1239_v0  ;;  %v1215_v1 = vld [vmem:[%s4746_s3 + $0xd8] sm:$0xff] }
 0x881   : > { %v1509_v3 = vsel %vm1508_vm6, %v3637_v2, 0.0  ;;  %1711 = vmatpush1.msra.mxu0 %v1238_v19  ;;  %v1251_v0 = vld [vmem:[%s4746_s3 + $0x1f8] sm:$0xff]  ;;  %v1250_v19 = vld [vmem:[%s4746_s3 + $0x1f0] sm:$0xff] }
 0x882   : > { %1510 = vadd.xlane.f32.xlu1 %v1509_v3  ;;  %1712 = vmatprep.subr.mxu0 %v1223_v23  ;;  %v1212_v3 = vld [vmem:[%s4746_s3 + $0xc0] sm:$0xff]  ;;  %v1235_v23 = vld [vmem:[%s4746_s3 + $0x178] sm:$0xff] }
 0x883   : > { %1713 = vmatpush1.msra.mxu0 %v1222_v25  ;;  %v1234_v25 = vld [vmem:[%s4746_s3 + $0x170] sm:$0xff] }
 0x884   : > { %1714 = vmatprep.subr.mxu0 %v1207_v27  ;;  %v1219_v27 = vld [vmem:[%s4746_s3 + $0xf8] sm:$0xff] }
 0x885   : > { %1715 = vmatpush1.msra.mxu0 %v1206_v30  ;;  %v1218_v30 = vld [vmem:[%s4746_s3 + $0xf0] sm:$0xff] }
 0x886   : > { %1716 = vmatprep.subr.mxu0 %v1191_v32  ;;  %v1203_v32 = vld [vmem:[%s4746_s3 + $0x78] sm:$0xff] }
 0x887   : > { %1717 = vmatpush1.msra.mxu0 %v1190_v33  ;;  %v1202_v33 = vld [vmem:[%s4746_s3 + $0x70] sm:$0xff] }
 0x888   : > { %1852 = vmatprep.subr.mxu0 %v1243_v35  ;;  %v1315_v35 = vld [vmem:[%s4747_s4 + $0x1f8] sm:$0xff] }
 0x90b   : > { %v1511_v4 = vpop.xlane.xlu1 %1510 }
 0x90c   : > { %v1512_v5 = vmul.f32 0.03125, %v1511_v4  ;;  %v1214_v4 = vld [vmem:[%s4746_s3 + $0xd0] sm:$0xff] }
 0x90e   : > { %v1513_v6 = vsub.f32 %v3637_v2, %v1512_v5  ;;  %v1197_v5 = vld [vmem:[%s4746_s3 + $0x48] sm:$0xff] }
 0x910   : > { %v1514_v12 = vmul.f32 %v1513_v6, %v1513_v6 }
 0x912   : > { %v1515_v16 = vsel %vm1508_vm6, %v1514_v12, 0.0  ;;  %v1196_v12 = vld [vmem:[%s4746_s3 + $0x40] sm:$0xff] }
 0x913   : > { %1516 = vadd.xlane.f32.xlu0 %v1515_v16  ;;  %v1198_v16 = vld [vmem:[%s4746_s3 + $0x50] sm:$0xff] }
 0x99c   : > { %v1517_v36 = vpop.xlane.xlu0 %1516 }
 0x99d   : > { %v1518_v37 = vmul.f32 0.03125, %v1517_v36  ;;  %v1267_v36 = vld [vmem:[%s4747_s4 + $0x78] sm:$0xff] }
 0x99f   : > { %v1519_v38 = vadd.f32 1e-05, %v1518_v37  ;;  %v1299_v37 = vld [vmem:[%s4747_s4 + $0x178] sm:$0xff] }
 0x9a1   : > { %3310 = vrsqrt.f32 %v1519_v38  ;;  %v1282_v38 = vld [vmem:[%s4747_s4 + $0xf0] sm:$0xff] }
 0x9ae   : > { %v3311_v41 = vpop.eup %3310 }
 0x9af   : > { %v1521_v43 = vmul.f32 %v3311_v41, %v1513_v6  ;;  %v1199_v6 = vld [vmem:[%s4746_s3 + $0x58] sm:$0xff]  ;;  %v1298_v41 = vld [vmem:[%s4747_s4 + $0x170] sm:$0xff] }
 0x9b1   : > { %v1524_v44 = vmul.f32 %v1522_v40, %v1521_v43  ;;  %v1266_v40 = vld [vmem:[%s4747_s4 + $0x70] sm:$0xff]  ;;  %v1313_v43 = vld [vmem:[%s4747_s4 + $0x1e8] sm:$0xff] }
 0x9b3   : > { %v3699_v9 = vadd.f32 %v1525_v42, %v1524_v44  ;;  %v1281_v42 = vld [vmem:[%s4747_s4 + $0xe8] sm:$0xff] }
 0x9b4   : > { %v1265_v44 = vld [vmem:[%s4747_s4 + $0x68] sm:$0xff] }
 0x9b5   : > { %2857 = vmatmul.mubr.msk.f32.vlgmr.msra.gmra.mxu1 %vm295_vm0, %v3699_v9  ;;  %2858 = vmatmul.mubr.msk.f32.vlgmr.msra.gmra.mxu0 %vm295_vm0, %v3699_v9 }
 0x9b6   : > { %1782 = vmatpush1.msra.mxu1 %v1240_v39  ;;  %1853 = vmatpush1.msra.mxu0 %v1242_v10  ;;  %v1280_v39 = vld [vmem:[%s4747_s4 + $0xe0] sm:$0xff] }
 0x9b7   : > { %1783 = vmatprep.subr.mxu1 %v1225_v45  ;;  %1854 = vmatprep.subr.mxu0 %v1227_v15  ;;  %v1312_v10 = vld [vmem:[%s4747_s4 + $0x1e0] sm:$0xff] }
 0x9b8   : > { %1784 = vmatpush1.msra.mxu1 %v1224_v46  ;;  %1855 = vmatpush1.msra.mxu0 %v1226_v47  ;;  %v1264_v45 = vld [vmem:[%s4747_s4 + $0x60] sm:$0xff]  ;;  %v1279_v46 = vld [vmem:[%s4747_s4 + $0xd8] sm:$0xff] }
 0x9b9   : > { %1785 = vmatprep.subr.mxu1 %v1209_v48  ;;  %1856 = vmatprep.subr.mxu0 %v1211_v49  ;;  %v1296_v15 = vld [vmem:[%s4747_s4 + $0x160] sm:$0xff]  ;;  %v1311_v47 = vld [vmem:[%s4747_s4 + $0x1d8] sm:$0xff] }
 0x9ba   : > { %1786 = vmatpush1.msra.mxu1 %v1208_v50  ;;  %1857 = vmatpush1.msra.mxu0 %v1210_v51  ;;  %v1263_v48 = vld [vmem:[%s4747_s4 + $0x58] sm:$0xff]  ;;  %v1278_v50 = vld [vmem:[%s4747_s4 + $0xd0] sm:$0xff] }
 0x9bb   : > { %1787 = vmatprep.subr.mxu1 %v1193_v52  ;;  %1858 = vmatprep.subr.mxu0 %v1195_v53  ;;  %v1295_v49 = vld [vmem:[%s4747_s4 + $0x158] sm:$0xff]  ;;  %v1310_v51 = vld [vmem:[%s4747_s4 + $0x1d0] sm:$0xff] }
 0x9bc   : > { %1788 = vmatpush1.msra.mxu1 %v1192_v54  ;;  %1821 = vmatprep.mubr.f32.mxu1 %v3374_v8  ;;  %v1262_v52 = vld [vmem:[%s4747_s4 + $0x50] sm:$0xff]  ;;  %v1277_v54 = vld [vmem:[%s4747_s4 + $0xc8] sm:$0xff] }
 0x9bd   : > { %1859 = vmatpush1.msra.mxu0 %v1194_v55  ;;  %1892 = vmatprep.mubr.f32.mxu0 %v3374_v8  ;;  %v1294_v53 = vld [vmem:[%s4747_s4 + $0x150] sm:$0xff]  ;;  %v1309_v55 = vld [vmem:[%s4747_s4 + $0x1c8] sm:$0xff] }
 0x9be   : > { %2859 = vmatmul.mubr.msk.f32.vlgmr.msra.gmra.mxu1 %vm295_vm0, %v3699_v9  ;;  %2860 = vmatmul.mubr.msk.f32.vlgmr.msra.gmra.mxu0 %vm295_vm0, %v3699_v9 }
 0x9bf   : > { %1923 = vmatprep.subr.mxu1 %v1245_v56  ;;  %1994 = vmatprep.subr.mxu0 %v1247_v57  ;;  %v1261_v56 = vld [vmem:[%s4747_s4 + $0x48] sm:$0xff] }
 0x9c0   : > { %1924 = vmatpush1.msra.mxu1 %v1244_v58  ;;  %1995 = vmatpush1.msra.mxu0 %v1246_v59  ;;  %v1293_v57 = vld [vmem:[%s4747_s4 + $0x148] sm:$0xff]  ;;  %v1276_v58 = vld [vmem:[%s4747_s4 + $0xc0] sm:$0xff] }
 0x9c1   : > { %1925 = vmatprep.subr.mxu1 %v1229_v60  ;;  %1996 = vmatprep.subr.mxu0 %v1231_v61  ;;  %v1308_v59 = vld [vmem:[%s4747_s4 + $0x1c0] sm:$0xff] }
 0x9c2   : > { %1926 = vmatpush1.msra.mxu1 %v1228_v11  ;;  %1997 = vmatpush1.msra.mxu0 %v1230_v62  ;;  %v1260_v60 = vld [vmem:[%s4747_s4 + $0x40] sm:$0xff]  ;;  %v1275_v11 = vld [vmem:[%s4747_s4 + $0xb8] sm:$0xff] }
 0x9c3   : > { %1927 = vmatprep.subr.mxu1 %v1213_v63  ;;  %1998 = vmatprep.subr.mxu0 %v1215_v1  ;;  %v1292_v61 = vld [vmem:[%s4747_s4 + $0x140] sm:$0xff]  ;;  %v1307_v62 = vld [vmem:[%s4747_s4 + $0x1b8] sm:$0xff] }
 0x9c4   : > { %1928 = vmatpush1.msra.mxu1 %v1212_v3  ;;  %1999 = vmatpush1.msra.mxu0 %v1214_v4  ;;  %v1259_v63 = vld [vmem:[%s4747_s4 + $0x38] sm:$0xff]  ;;  %v1274_v3 = vld [vmem:[%s4747_s4 + $0xb0] sm:$0xff] }
 0x9c5   : > { %1929 = vmatprep.subr.mxu1 %v1197_v5  ;;  %2000 = vmatprep.subr.mxu0 %v1199_v6  ;;  %v1291_v1 = vld [vmem:[%s4747_s4 + $0x138] sm:$0xff]  ;;  %v1306_v4 = vld [vmem:[%s4747_s4 + $0x1b0] sm:$0xff] }
 0x9c6   : > { %1930 = vmatpush1.msra.mxu1 %v1196_v12  ;;  %1963 = vmatprep.mubr.f32.mxu1 %v3374_v8  ;;  %v1258_v5 = vld [vmem:[%s4747_s4 + $0x30] sm:$0xff]  ;;  %v1273_v12 = vld [vmem:[%s4747_s4 + $0xa8] sm:$0xff] }
 0x9c7   : > { %2001 = vmatpush1.msra.mxu0 %v1198_v16  ;;  %2034 = vmatprep.mubr.f32.mxu0 %v3374_v8  ;;  %v1290_v6 = vld [vmem:[%s4747_s4 + $0x130] sm:$0xff]  ;;  %v1305_v16 = vld [vmem:[%s4747_s4 + $0x1a8] sm:$0xff] }
 0x9c8   : > { %2861 = vmatmul.mubr.msk.f32.vlgmr.msra.gmra.mxu1 %vm295_vm0, %v3699_v9  ;;  %2862 = vmatmul.mubr.msk.f32.vlgmr.msra.gmra.mxu0 %vm295_vm0, %v3699_v9 }
 0x9c9   : > { %2065 = vmatprep.subr.mxu1 %v1249_v17  ;;  %2136 = vmatprep.subr.mxu0 %v1251_v0  ;;  %v1257_v17 = vld [vmem:[%s4747_s4 + $0x28] sm:$0xff] }
 0x9ca   : > { %2066 = vmatpush1.msra.mxu1 %v1248_v18  ;;  %2137 = vmatpush1.msra.mxu0 %v1250_v19  ;;  %v1289_v0 = vld [vmem:[%s4747_s4 + $0x128] sm:$0xff]  ;;  %v1272_v18 = vld [vmem:[%s4747_s4 + $0xa0] sm:$0xff] }
 0x9cb   : > { %2067 = vmatprep.subr.mxu1 %v1233_v22  ;;  %2138 = vmatprep.subr.mxu0 %v1235_v23  ;;  %v1304_v19 = vld [vmem:[%s4747_s4 + $0x1a0] sm:$0xff] }
 0x9cc   : > { %2068 = vmatpush1.msra.mxu1 %v1232_v24  ;;  %2139 = vmatpush1.msra.mxu0 %v1234_v25  ;;  %v1256_v22 = vld [vmem:[%s4747_s4 + $0x20] sm:$0xff]  ;;  %v1271_v24 = vld [vmem:[%s4747_s4 + $0x98] sm:$0xff] }
 0x9cd   : > { %2069 = vmatprep.subr.mxu1 %v1217_v26  ;;  %2140 = vmatprep.subr.mxu0 %v1219_v27  ;;  %v1288_v23 = vld [vmem:[%s4747_s4 + $0x120] sm:$0xff]  ;;  %v1303_v25 = vld [vmem:[%s4747_s4 + $0x198] sm:$0xff] }
 0x9ce   : > { %2070 = vmatpush1.msra.mxu1 %v1216_v28  ;;  %2141 = vmatpush1.msra.mxu0 %v1218_v30  ;;  %v1255_v26 = vld [vmem:[%s4747_s4 + $0x18] sm:$0xff]  ;;  %v1270_v28 = vld [vmem:[%s4747_s4 + $0x90] sm:$0xff] }
 0x9cf   : > { %2071 = vmatprep.subr.mxu1 %v1201_v31  ;;  %2142 = vmatprep.subr.mxu0 %v1203_v32  ;;  %v1287_v27 = vld [vmem:[%s4747_s4 + $0x118] sm:$0xff]  ;;  %v1302_v30 = vld [vmem:[%s4747_s4 + $0x190] sm:$0xff] }
 0x9d0   : > { %2072 = vmatpush1.msra.mxu1 %v1200_v7  ;;  %2105 = vmatprep.mubr.f32.mxu1 %v3374_v8  ;;  %v1254_v31 = vld [vmem:[%s4747_s4 + $0x10] sm:$0xff]  ;;  %v1269_v7 = vld [vmem:[%s4747_s4 + $0x88] sm:$0xff] }
 0x9d1   : > { %2143 = vmatpush1.msra.mxu0 %v1202_v33  ;;  %2176 = vmatprep.mubr.f32.mxu0 %v3374_v8  ;;  %v1314_v8 = vld [vmem:[%s4747_s4 + $0x1f0] sm:$0xff]  ;;  %v1301_v33 = vld [vmem:[%s4747_s4 + $0x188] sm:$0xff] }
 0x9d2   : > { %2863 = vmatmul.mubr.msk.f32.vlgmr.msra.gmra.mxu1 %vm295_vm0, %v3699_v9  ;;  %2864 = vmatmul.mubr.msk.f32.vlgmr.msra.gmra.mxu0 %vm295_vm0, %v3699_v9  ;;  %v1297_v9 = vld [vmem:[%s4747_s4 + $0x168] sm:$0xff]  ;;  %v1286_v32 = vld [vmem:[%s4747_s4 + $0x110] sm:$0xff] }
 0x9d3   : > { %2894 = vmatprep.subr.mxu1 %v1283_v34  ;;  %2929 = vmatprep.subr.mxu0 %v1315_v35  ;;  %v1253_v34 = vld [vmem:[%s4747_s4 + $0x8] sm:$0xff] }
 0x9d4   : > { %2895 = vmatpush3.msra.mxu1 %v1267_v36  ;;  %2930 = vmatpush3.msra.mxu0 %v1299_v37  ;;  %v1285_v35 = vld [vmem:[%s4747_s4 + $0x108] sm:$0xff]  ;;  %v1268_v36 = vld [vmem:[%s4747_s4 + $0x80] sm:$0xff] }
 0x9d5   : > { %2896 = vmatprep.subr.mxu1 %v1282_v38  ;;  %2931 = vmatprep.subr.mxu0 %v1314_v8  ;;  %v1300_v37 = vld [vmem:[%s4747_s4 + $0x180] sm:$0xff] }
 0x9d6   : > { %2897 = vmatpush3.msra.mxu1 %v1266_v40  ;;  %2932 = vmatpush3.msra.mxu0 %v1298_v41  ;;  %v1252_v38 = vld [vmem:[%s4747_s4] sm:$0xff]  ;;  %v1347_v40 = vld [vmem:[%s4747_s4 + $0x2f8] sm:$0xff] }
 0x9d7   : > { %2898 = vmatprep.subr.mxu1 %v1281_v42  ;;  %2933 = vmatprep.subr.mxu0 %v1313_v43  ;;  %v1284_v8 = vld [vmem:[%s4747_s4 + $0x100] sm:$0xff]  ;;  %v1379_v41 = vld [vmem:[%s4747_s4 + $0x3f8] sm:$0xff]  ;;  %v1550_v42 = vsub.s32 4, %v3528_v13  ;;  %v4063_v43 = vld [vmem:[%s4749_s6 + $0x8] sm:$0xff] }
 0x9d8   : > { %2899 = vmatpush3.msra.mxu1 %v1265_v44  ;;  %2934 = vmatpush3.msra.mxu0 %v1297_v9  ;;  %v1542_v9 = vsub.s32 2, %v3528_v13 }
 0x9d9   : > { %2900 = vmatprep.subr.mxu1 %v1280_v39  ;;  %2935 = vmatprep.subr.mxu0 %v1312_v10  ;;  %v4068_v44 = vrot.slane %v4063_v43, %v1550_v42  ;;  %v4074_v39 = vld [vmem:[%s4749_s6] sm:$0xff]  ;;  %v1546_v10 = vsub.s32 3, %v3528_v13 }
 0x9da   : > { %2901 = vmatpush3.msra.mxu1 %v1264_v45  ;;  %2936 = vmatpush3.msra.mxu0 %v1296_v15  ;;  %v1535_v45 = vrot.slane %v4074_v39, %v3542_v20  ;;  %v1543_v15 = vrot.slane %v4074_v39, %v1542_v9 }
 0x9db   : > { %2902 = vmatprep.subr.mxu1 %v1279_v46  ;;  %2937 = vmatprep.subr.mxu0 %v1311_v47  ;;  %v1539_v46 = vrot.slane %v4074_v39, %v3545_v21  ;;  %v1547_v47 = vrot.slane %v4074_v39, %v1546_v10 }
 0x9dc   : > { %2903 = vmatpush3.msra.mxu1 %v1263_v48  ;;  %2938 = vmatpush3.msra.mxu0 %v1295_v49 }
 0x9dd   : > { %2904 = vmatprep.subr.mxu1 %v1278_v50  ;;  %2939 = vmatprep.subr.mxu0 %v1310_v51 }
 0x9de   : > { %2905 = vmatpush3.msra.mxu1 %v1262_v52  ;;  %2940 = vmatpush3.msra.mxu0 %v1294_v53 }
 0x9df   : > { %2906 = vmatprep.subr.mxu1 %v1277_v54  ;;  %2941 = vmatprep.subr.mxu0 %v1309_v55 }
 0x9e0   : > { %2907 = vmatpush3.msra.mxu1 %v1261_v56  ;;  %2942 = vmatpush3.msra.mxu0 %v1293_v57  ;;  %v1562_v56 = vsub.s32 7, %v3528_v13  ;;  %v1381_v13 = vld [vmem:[%s4747_s4 + $0x408] sm:$0xff] }
 0x9e1   : > { %2908 = vmatprep.subr.mxu1 %v1276_v58  ;;  %2943 = vmatprep.subr.mxu0 %v1308_v59 }
 0x9e2   : > { %2909 = vmatpush3.msra.mxu1 %v1260_v60  ;;  %2944 = vmatpush3.msra.mxu0 %v1292_v61  ;;  %v1331_v61 = vld [vmem:[%s4747_s4 + $0x278] sm:$0xff] }
 0x9e3   : > { %2910 = vmatprep.subr.mxu1 %v1275_v11  ;;  %2945 = vmatprep.subr.mxu0 %v1307_v62  ;;  %v1363_v11 = vld [vmem:[%s4747_s4 + $0x378] sm:$0xff]  ;;  %v1346_v62 = vld [vmem:[%s4747_s4 + $0x2f0] sm:$0xff] }
 0x9e4   : > { %2911 = vmatpush3.msra.mxu1 %v1259_v63  ;;  %2946 = vmatpush3.msra.mxu0 %v1291_v1  ;;  %v1378_v63 = vld [vmem:[%s4747_s4 + $0x3f0] sm:$0xff]  ;;  %v1555_v1 = vrot.slane %v4074_v39, %v3531_v14 }
 0x9e5   : > { %2912 = vmatprep.subr.mxu1 %v1274_v3  ;;  %2947 = vmatprep.subr.mxu0 %v1306_v4  ;;  %v1563_v3 = vrot.slane %v4074_v39, %v1562_v56  ;;  %v1330_v4 = vld [vmem:[%s4747_s4 + $0x270] sm:$0xff] }
 0x9e6   : > { %2913 = vmatpush3.msra.mxu1 %v1258_v5  ;;  %2948 = vmatpush3.msra.mxu0 %v1290_v6  ;;  %v1362_v5 = vld [vmem:[%s4747_s4 + $0x370] sm:$0xff] }
 0x9e7   : > { %2914 = vmatprep.subr.mxu1 %v1273_v12  ;;  %2949 = vmatprep.subr.mxu0 %v1305_v16  ;;  %v1345_v16 = vld [vmem:[%s4747_s4 + $0x2e8] sm:$0xff] }
 0x9e8   : > { %2915 = vmatpush3.msra.mxu1 %v1257_v17  ;;  %2950 = vmatpush3.msra.mxu0 %v1289_v0  ;;  %v1377_v17 = vld [vmem:[%s4747_s4 + $0x3e8] sm:$0xff] }
 0x9e9   : > { %2916 = vmatprep.subr.mxu1 %v1272_v18  ;;  %2951 = vmatprep.subr.mxu0 %v1304_v19  ;;  %v1329_v0 = vld [vmem:[%s4747_s4 + $0x268] sm:$0xff] }
 0x9ea   : > { %2917 = vmatpush3.msra.mxu1 %v1256_v22  ;;  %2952 = vmatpush3.msra.mxu0 %v1288_v23  ;;  %v1361_v18 = vld [vmem:[%s4747_s4 + $0x368] sm:$0xff]  ;;  %v1344_v23 = vld [vmem:[%s4747_s4 + $0x2e0] sm:$0xff] }
 0x9eb   : > { %2918 = vmatprep.subr.mxu1 %v1271_v24  ;;  %2953 = vmatprep.subr.mxu0 %v1303_v25  ;;  %v1376_v24 = vld [vmem:[%s4747_s4 + $0x3e0] sm:$0xff] }
 0x9ec   : > { %2919 = vmatpush3.msra.mxu1 %v1255_v26  ;;  %2954 = vmatpush3.msra.mxu0 %v1287_v27  ;;  %v1328_v27 = vld [vmem:[%s4747_s4 + $0x260] sm:$0xff] }
 0x9ed   : > { %2920 = vmatprep.subr.mxu1 %v1270_v28  ;;  %2955 = vmatprep.subr.mxu0 %v1302_v30  ;;  %v1360_v28 = vld [vmem:[%s4747_s4 + $0x360] sm:$0xff] }
 0x9ee   : > { %2921 = vmatpush3.msra.mxu1 %v1254_v31  ;;  %2956 = vmatpush3.msra.mxu0 %v1286_v32  ;;  %v1343_v32 = vld [vmem:[%s4747_s4 + $0x2d8] sm:$0xff] }
 0x9ef   : > { %2922 = vmatprep.subr.mxu1 %v1269_v7  ;;  %2957 = vmatprep.subr.mxu0 %v1301_v33  ;;  %v1375_v7 = vld [vmem:[%s4747_s4 + $0x3d8] sm:$0xff] }
 0x9f0   : > { %2923 = vmatpush3.msra.mxu1 %v1253_v34  ;;  %2958 = vmatpush3.msra.mxu0 %v1285_v35  ;;  %v1327_v33 = vld [vmem:[%s4747_s4 + $0x258] sm:$0xff]  ;;  %v1342_v35 = vld [vmem:[%s4747_s4 + $0x2d0] sm:$0xff] }
 0x9f1   : > { %2924 = vmatprep.subr.mxu1 %v1268_v36  ;;  %2959 = vmatprep.subr.mxu0 %v1300_v37  ;;  %v1359_v34 = vld [vmem:[%s4747_s4 + $0x358] sm:$0xff]  ;;  %v1374_v36 = vld [vmem:[%s4747_s4 + $0x3d0] sm:$0xff] }
 0x9f2   : > { %2925 = vmatpush3.msra.mxu1 %v1252_v38  ;;  %2960 = vmatpush3.msra.mxu0 %v1284_v8  ;;  %v1326_v37 = vld [vmem:[%s4747_s4 + $0x250] sm:$0xff]  ;;  %v1341_v8 = vld [vmem:[%s4747_s4 + $0x2c8] sm:$0xff] }
 0x9f3   : > { %2964 = vmatprep.subr.mxu1 %v1347_v40  ;;  %2999 = vmatprep.subr.mxu0 %v1379_v41  ;;  %v1358_v38 = vld [vmem:[%s4747_s4 + $0x350] sm:$0xff]  ;;  %v1373_v40 = vld [vmem:[%s4747_s4 + $0x3c8] sm:$0xff] }
 0x9f4   : > { %v1325_v41 = vld [vmem:[%s4747_s4 + $0x248] sm:$0xff] }
 0xa75   : > { %v1681_v48 = vpop.f32.mrf.mxu1  ;;  %v1752_v49 = vpop.f32.mrf.mxu0 }
 0xa76   : > { %v1682_v50 = vadd.f32 %v1681_v48, %v1535_v45  ;;  %v1753_v51 = vadd.f32 %v1752_v49, %v1543_v15  ;;  %v1357_v45 = vld [vmem:[%s4747_s4 + $0x348] sm:$0xff]  ;;  %v1340_v15 = vld [vmem:[%s4747_s4 + $0x2c0] sm:$0xff]  ;;  %v1339_v49 = vld [vmem:[%s4747_s4 + $0x2b8] sm:$0xff] }
 0xa77   : > { %v1683_v52 = vpop.f32.mrf.mxu1  ;;  %v1754_v53 = vpop.f32.mrf.mxu0  ;;  %v1356_v48 = vld [vmem:[%s4747_s4 + $0x340] sm:$0xff] }
 0xa78   : > { %v1684_v54 = vadd.f32 %v1683_v52, %v1539_v46  ;;  %v1755_v55 = vadd.f32 %v1754_v53, %v1547_v47  ;;  %v2183_v59 = vmax.f32 %v1682_v50, 0.0  ;;  %v2185_v60 = vmax.f32 %v1753_v51, 0.0  ;;  %v1372_v46 = vld [vmem:[%s4747_s4 + $0x3c0] sm:$0xff]  ;;  %v1371_v50 = vld [vmem:[%s4747_s4 + $0x3b8] sm:$0xff]  ;;  %v1338_v53 = vld [vmem:[%s4747_s4 + $0x2b0] sm:$0xff] }
 0xa79   : > { %v1324_v47 = vld [vmem:[%s4747_s4 + $0x240] sm:$0xff]  ;;  %v1323_v51 = vld [vmem:[%s4747_s4 + $0x238] sm:$0xff] }
 0xa7a   : > { %v2184_v57 = vmax.f32 %v1684_v54, 0.0  ;;  %v2186_v58 = vmax.f32 %v1755_v55, 0.0  ;;  %v1355_v52 = vld [vmem:[%s4747_s4 + $0x338] sm:$0xff]  ;;  %v1370_v54 = vld [vmem:[%s4747_s4 + $0x3b0] sm:$0xff] }
 0xa7b   : > { %v1322_v55 = vld [vmem:[%s4747_s4 + $0x230] sm:$0xff] }
 0xa7c   : > { %2263 = vmatprep.mubr.f32.mxu1 %v2184_v57  ;;  %2333 = vmatprep.mubr.f32.mxu0 %v2186_v58  ;;  %v1354_v57 = vld [vmem:[%s4747_s4 + $0x330] sm:$0xff]  ;;  %v1337_v58 = vld [vmem:[%s4747_s4 + $0x2a8] sm:$0xff] }
 0xa7d   : > { %2264 = vmatmul.mubr.f32.vlgmr.msra.gmra.mxu1 %v2183_v59  ;;  %2334 = vmatmul.mubr.f32.vlgmr.msra.gmra.mxu0 %v2185_v60  ;;  %v1369_v59 = vld [vmem:[%s4747_s4 + $0x3a8] sm:$0xff] }
 0xa7e   : > { %v4111_v6 = vpop.f32.mrf.mxu1  ;;  %v4113_v12 = vpop.f32.mrf.mxu0  ;;  %2965 = vmatpush3.msra.mxu1 %v1331_v61  ;;  %3000 = vmatpush3.msra.mxu0 %v1363_v11  ;;  %v1321_v60 = vld [vmem:[%s4747_s4 + $0x228] sm:$0xff]  ;;  %v1336_v11 = vld [vmem:[%s4747_s4 + $0x2a0] sm:$0xff] }
 0xa7f   : > { %2966 = vmatprep.subr.mxu1 %v1346_v62  ;;  %3001 = vmatprep.subr.mxu0 %v1378_v63  ;;  %v1353_v61 = vld [vmem:[%s4747_s4 + $0x328] sm:$0xff]  ;;  %v1368_v62 = vld [vmem:[%s4747_s4 + $0x3a0] sm:$0xff] }
 0xa80   : > { %v1825_v19 = vpop.f32.mrf.mxu1  ;;  %v1896_v22 = vpop.f32.mrf.mxu0  ;;  %2967 = vmatpush3.msra.mxu1 %v1330_v4  ;;  %3002 = vmatpush3.msra.mxu0 %v1362_v5  ;;  %v1320_v63 = vld [vmem:[%s4747_s4 + $0x220] sm:$0xff]  ;;  %v1335_v4 = vld [vmem:[%s4747_s4 + $0x298] sm:$0xff] }
 0xa81   : > { %v1826_v25 = vadd.f32 %v1825_v19, %v1555_v1  ;;  %v1897_v26 = vadd.f32 %v1896_v22, %v1563_v3  ;;  %2968 = vmatprep.subr.mxu1 %v1345_v16  ;;  %3003 = vmatprep.subr.mxu0 %v1377_v17  ;;  %v1352_v1 = vld [vmem:[%s4747_s4 + $0x320] sm:$0xff]  ;;  %v1367_v5 = vld [vmem:[%s4747_s4 + $0x398] sm:$0xff]  ;;  %v1551_v16 = vrot.slane %v4074_v39, %v1550_v42  ;;  %v1334_v42 = vld [vmem:[%s4747_s4 + $0x290] sm:$0xff] }
 0xa82   : > { %2969 = vmatpush3.msra.mxu1 %v1329_v0  ;;  %3004 = vmatpush3.msra.mxu0 %v1361_v18  ;;  %v1559_v17 = vrot.slane %v4074_v39, %v3555_v29  ;;  %v1319_v18 = vld [vmem:[%s4747_s4 + $0x218] sm:$0xff]  ;;  %v1366_v39 = vld [vmem:[%s4747_s4 + $0x390] sm:$0xff]  ;;  %v1571_v22 = vrot.slane %v4063_v43, %v3545_v21  ;;  %v1333_v21 = vld [vmem:[%s4747_s4 + $0x288] sm:$0xff] }
 0xa83   : > { %v2188_v30 = vmax.f32 %v1826_v25, 0.0  ;;  %v2190_v31 = vmax.f32 %v1897_v26, 0.0  ;;  %2970 = vmatprep.subr.mxu1 %v1344_v23  ;;  %3005 = vmatprep.subr.mxu0 %v1376_v24  ;;  %v1351_v19 = vld [vmem:[%s4747_s4 + $0x318] sm:$0xff]  ;;  %v1318_v23 = vld [vmem:[%s4747_s4 + $0x210] sm:$0xff]  ;;  %v1579_v26 = vrot.slane %v4063_v43, %v1546_v10  ;;  %v1317_v10 = vld [vmem:[%s4747_s4 + $0x208] sm:$0xff] }
 0xa84   : > { %2971 = vmatpush3.msra.mxu1 %v1328_v27  ;;  %3006 = vmatpush3.msra.mxu0 %v1360_v28  ;;  %v1350_v24 = vld [vmem:[%s4747_s4 + $0x310] sm:$0xff]  ;;  %v1365_v27 = vld [vmem:[%s4747_s4 + $0x388] sm:$0xff]  ;;  %v1824_v28 = vadd.f32 %v4111_v6, %v1551_v16  ;;  %v1364_v6 = vld [vmem:[%s4747_s4 + $0x380] sm:$0xff] }
 0xa85   : > { %2403 = vmatprep.mubr.f32.mxu1 %v2188_v30  ;;  %2473 = vmatprep.mubr.f32.mxu0 %v2190_v31  ;;  %v1895_v30 = vadd.f32 %v4113_v12, %v1559_v17  ;;  %v1437_v16 = vld [vmem:[%s4747_s4 + $0x5c8] sm:$0xff] }
 0xa86   : > { %2972 = vmatprep.subr.mxu1 %v1343_v32  ;;  %3007 = vmatprep.subr.mxu0 %v1375_v7  ;;  %v1349_v32 = vld [vmem:[%s4747_s4 + $0x308] sm:$0xff]  ;;  %v1332_v7 = vld [vmem:[%s4747_s4 + $0x280] sm:$0xff] }
 0xa87   : > { %2973 = vmatpush3.msra.mxu1 %v1327_v33  ;;  %3008 = vmatpush3.msra.mxu0 %v1359_v34  ;;  %v1316_v33 = vld [vmem:[%s4747_s4 + $0x200] sm:$0xff]  ;;  %v1389_v17 = vld [vmem:[%s4747_s4 + $0x448] sm:$0xff] }
 0xa88   : > { %2974 = vmatprep.subr.mxu1 %v1342_v35  ;;  %3009 = vmatprep.subr.mxu0 %v1374_v36  ;;  %v4235_v3 = vpop.f32.mrf.mxu1  ;;  %v4248_v0 = vpop.f32.mrf.mxu0  ;;  %v1348_v34 = vld [vmem:[%s4747_s4 + $0x300] sm:$0xff]  ;;  %v2187_v36 = vmax.f32 %v1824_v28, 0.0  ;;  %v1386_v28 = vld [vmem:[%s4747_s4 + $0x430] sm:$0xff] }
 0xa89   : > { %2975 = vmatpush3.msra.mxu1 %v1326_v37  ;;  %3010 = vmatpush3.msra.mxu0 %v1358_v38  ;;  %v2189_v37 = vmax.f32 %v1895_v30, 0.0  ;;  %v1411_v38 = vld [vmem:[%s4747_s4 + $0x4f8] sm:$0xff]  ;;  %v1418_v30 = vld [vmem:[%s4747_s4 + $0x530] sm:$0xff] }
 0xa8a   : > { %2976 = vmatprep.subr.mxu1 %v1341_v8  ;;  %3011 = vmatprep.subr.mxu0 %v1373_v40  ;;  %v1967_v25 = vpop.f32.mrf.mxu1  ;;  %v2038_v31 = vpop.f32.mrf.mxu0  ;;  %v1443_v8 = vld [vmem:[%s4747_s4 + $0x5f8] sm:$0xff] }
 0xa8b   : > { %2977 = vmatpush3.msra.mxu1 %v1325_v41  ;;  %3012 = vmatpush3.msra.mxu0 %v1357_v45  ;;  %v1968_v12 = vadd.f32 %v1967_v25, %v1571_v22  ;;  %v2039_v35 = vadd.f32 %v2038_v31, %v1579_v26  ;;  %v1395_v40 = vld [vmem:[%s4747_s4 + $0x478] sm:$0xff]  ;;  %v1420_v22 = vld [vmem:[%s4747_s4 + $0x540] sm:$0xff]  ;;  %v1401_v31 = vld [vmem:[%s4747_s4 + $0x4a8] sm:$0xff] }
 0xa8c   : > { %2978 = vmatprep.subr.mxu1 %v1340_v15  ;;  %3013 = vmatprep.subr.mxu0 %v1372_v46  ;;  %v1427_v45 = vld [vmem:[%s4747_s4 + $0x578] sm:$0xff]  ;;  %v1410_v46 = vld [vmem:[%s4747_s4 + $0x4f0] sm:$0xff] }
 0xa8d   : > { %2979 = vmatpush3.msra.mxu1 %v1324_v47  ;;  %3014 = vmatpush3.msra.mxu0 %v1356_v48  ;;  %v2192_v41 = vmax.f32 %v1968_v12, 0.0  ;;  %v2194_v15 = vmax.f32 %v2039_v35, 0.0  ;;  %v1442_v47 = vld [vmem:[%s4747_s4 + $0x5f0] sm:$0xff]  ;;  %v1387_v25 = vld [vmem:[%s4747_s4 + $0x438] sm:$0xff]  ;;  %v1432_v12 = vld [vmem:[%s4747_s4 + $0x5a0] sm:$0xff] }
 0xa8e   : > { %2980 = vmatprep.subr.mxu1 %v1339_v49  ;;  %3015 = vmatprep.subr.mxu0 %v1371_v50  ;;  %v1394_v48 = vld [vmem:[%s4747_s4 + $0x470] sm:$0xff]  ;;  %v1409_v50 = vld [vmem:[%s4747_s4 + $0x4e8] sm:$0xff]  ;;  %v1419_v26 = vld [vmem:[%s4747_s4 + $0x538] sm:$0xff] }
 0xa8f   : > { %2981 = vmatpush3.msra.mxu1 %v1323_v51  ;;  %3016 = vmatpush3.msra.mxu0 %v1355_v52  ;;  %v1426_v49 = vld [vmem:[%s4747_s4 + $0x570] sm:$0xff]  ;;  %v1441_v51 = vld [vmem:[%s4747_s4 + $0x5e8] sm:$0xff] }
 0xa90   : > { %2982 = vmatprep.subr.mxu1 %v1338_v53  ;;  %3017 = vmatprep.subr.mxu0 %v1370_v54  ;;  %v1393_v52 = vld [vmem:[%s4747_s4 + $0x468] sm:$0xff]  ;;  %v1408_v54 = vld [vmem:[%s4747_s4 + $0x4e0] sm:$0xff] }
 0xa91   : > { %2983 = vmatpush3.msra.mxu1 %v1322_v55  ;;  %3018 = vmatpush3.msra.mxu0 %v1354_v57  ;;  %v1425_v53 = vld [vmem:[%s4747_s4 + $0x568] sm:$0xff]  ;;  %v1440_v55 = vld [vmem:[%s4747_s4 + $0x5e0] sm:$0xff] }
 0xa92   : > { %2984 = vmatprep.subr.mxu1 %v1337_v58  ;;  %3019 = vmatprep.subr.mxu0 %v1369_v59  ;;  %v1392_v57 = vld [vmem:[%s4747_s4 + $0x460] sm:$0xff]  ;;  %v1407_v59 = vld [vmem:[%s4747_s4 + $0x4d8] sm:$0xff]  ;;  %v4443_v35 = vpop.f32.mrf.mxu1 }
 0xa93   : > { %2985 = vmatpush3.msra.mxu1 %v1321_v60  ;;  %3020 = vmatpush3.msra.mxu0 %v1353_v61  ;;  %v1424_v58 = vld [vmem:[%s4747_s4 + $0x560] sm:$0xff]  ;;  %v1439_v60 = vld [vmem:[%s4747_s4 + $0x5d8] sm:$0xff] }
 0xa94   : > { %2986 = vmatprep.subr.mxu1 %v1336_v11  ;;  %3021 = vmatprep.subr.mxu0 %v1368_v62  ;;  %v1391_v61 = vld [vmem:[%s4747_s4 + $0x458] sm:$0xff]  ;;  %v1406_v62 = vld [vmem:[%s4747_s4 + $0x4d0] sm:$0xff] }
 0xa95   : > { %2987 = vmatpush3.msra.mxu1 %v1320_v63  ;;  %3022 = vmatpush3.msra.mxu0 %v1352_v1  ;;  %v1423_v11 = vld [vmem:[%s4747_s4 + $0x558] sm:$0xff]  ;;  %v1438_v63 = vld [vmem:[%s4747_s4 + $0x5d0] sm:$0xff] }
 0xa96   : > { %2988 = vmatprep.subr.mxu1 %v1335_v4  ;;  %3023 = vmatprep.subr.mxu0 %v1367_v5  ;;  %v1390_v1 = vld [vmem:[%s4747_s4 + $0x450] sm:$0xff]  ;;  %v1405_v5 = vld [vmem:[%s4747_s4 + $0x4c8] sm:$0xff] }
 0xa97   : > { %2989 = vmatpush3.msra.mxu1 %v1319_v18  ;;  %3024 = vmatpush3.msra.mxu0 %v1351_v19  ;;  %v1422_v4 = vld [vmem:[%s4747_s4 + $0x550] sm:$0xff]  ;;  %v1421_v18 = vld [vmem:[%s4747_s4 + $0x548] sm:$0xff]  ;;  %v1404_v19 = vld [vmem:[%s4747_s4 + $0x4c0] sm:$0xff] }
 0xa98   : > { %2990 = vmatprep.subr.mxu1 %v1334_v42  ;;  %3025 = vmatprep.subr.mxu0 %v1366_v39  ;;  %v1436_v42 = vld [vmem:[%s4747_s4 + $0x5c0] sm:$0xff] }
 0xa99   : > { %2991 = vmatpush3.msra.mxu1 %v1318_v23  ;;  %3026 = vmatpush3.msra.mxu0 %v1350_v24  ;;  %v1388_v39 = vld [vmem:[%s4747_s4 + $0x440] sm:$0xff]  ;;  %v1403_v23 = vld [vmem:[%s4747_s4 + $0x4b8] sm:$0xff] }
 0xa9a   : > { %2992 = vmatprep.subr.mxu1 %v1333_v21  ;;  %3027 = vmatprep.subr.mxu0 %v1365_v27  ;;  %v1435_v24 = vld [vmem:[%s4747_s4 + $0x5b8] sm:$0xff]  ;;  %v1402_v21 = vld [vmem:[%s4747_s4 + $0x4b0] sm:$0xff] }
 0xa9b   : > { %2993 = vmatpush3.msra.mxu1 %v1317_v10  ;;  %3028 = vmatpush3.msra.mxu0 %v1349_v32  ;;  %v1434_v27 = vld [vmem:[%s4747_s4 + $0x5b0] sm:$0xff]  ;;  %v1433_v10 = vld [vmem:[%s4747_s4 + $0x5a8] sm:$0xff] }
 0xa9c   : > { %2994 = vmatprep.subr.mxu1 %v1332_v7  ;;  %3029 = vmatprep.subr.mxu0 %v1364_v6  ;;  %v1385_v32 = vld [vmem:[%s4747_s4 + $0x428] sm:$0xff]  ;;  %v1400_v6 = vld [vmem:[%s4747_s4 + $0x4a0] sm:$0xff] }
 0xa9d   : > { %2995 = vmatpush3.msra.mxu1 %v1316_v33  ;;  %3030 = vmatpush3.msra.mxu0 %v1348_v34  ;;  %v1417_v7 = vld [vmem:[%s4747_s4 + $0x528] sm:$0xff]  ;;  %v1384_v33 = vld [vmem:[%s4747_s4 + $0x420] sm:$0xff] }
 0xa9e   : > { %2404 = vmatmul.mubr.f32.vlgmr.msra.gmra.mxu1 %v2187_v36  ;;  %2474 = vmatmul.mubr.f32.vlgmr.msra.gmra.mxu0 %v2189_v37  ;;  %v1416_v34 = vld [vmem:[%s4747_s4 + $0x520] sm:$0xff]  ;;  %v1399_v36 = vld [vmem:[%s4747_s4 + $0x498] sm:$0xff] }
 0xa9f   : > { %3034 = vmatprep.subr.mxu1 %v1411_v38  ;;  %3069 = vmatprep.subr.mxu0 %v1443_v8  ;;  %v1431_v37 = vld [vmem:[%s4747_s4 + $0x598] sm:$0xff]  ;;  %v1567_v38 = vrot.slane %v4063_v43, %v3542_v20  ;;  %v1575_v8 = vrot.slane %v4063_v43, %v1542_v9  ;;  %v1398_v20 = vld [vmem:[%s4747_s4 + $0x490] sm:$0xff] }
 0xaa0   : > { %3035 = vmatpush3.msra.mxu1 %v1395_v40  ;;  %2543 = vmatprep.mubr.f32.mxu1 %v2192_v41  ;;  %v4456_v40 = vpop.f32.mrf.mxu0  ;;  %v1383_v41 = vld [vmem:[%s4747_s4 + $0x418] sm:$0xff]  ;;  %v1430_v9 = vld [vmem:[%s4747_s4 + $0x590] sm:$0xff] }
 0xaa1   : > { %3070 = vmatpush3.msra.mxu0 %v1427_v45  ;;  %2613 = vmatprep.mubr.f32.mxu0 %v2194_v15  ;;  %v1415_v45 = vld [vmem:[%s4747_s4 + $0x518] sm:$0xff]  ;;  %v1587_v15 = vrot.slane %v4063_v43, %v3531_v14  ;;  %v1397_v14 = vld [vmem:[%s4747_s4 + $0x488] sm:$0xff] }
 0xaa2   : > { %3036 = vmatprep.subr.mxu1 %v1410_v46  ;;  %3071 = vmatprep.subr.mxu0 %v1442_v47  ;;  %v1382_v46 = vld [vmem:[%s4747_s4 + $0x410] sm:$0xff] }
 0xaa3   : > { %3037 = vmatpush3.msra.mxu1 %v1394_v48  ;;  %3072 = vmatpush3.msra.mxu0 %v1426_v49  ;;  %v1414_v47 = vld [vmem:[%s4747_s4 + $0x510] sm:$0xff]  ;;  %v2109_v48 = vpop.f32.mrf.mxu1  ;;  %v1595_v49 = vrot.slane %v4063_v43, %v1562_v56  ;;  %v1413_v56 = vld [vmem:[%s4747_s4 + $0x508] sm:$0xff] }
 0xaa4   : > { %3038 = vmatprep.subr.mxu1 %v1409_v50  ;;  %3073 = vmatprep.subr.mxu0 %v1441_v51  ;;  %v1429_v50 = vld [vmem:[%s4747_s4 + $0x588] sm:$0xff]  ;;  %v1966_v51 = vadd.f32 %v4235_v3, %v1567_v38  ;;  %v1428_v3 = vld [vmem:[%s4747_s4 + $0x580] sm:$0xff] }
 0xaa5   : > { %3039 = vmatpush3.msra.mxu1 %v1393_v52  ;;  %3074 = vmatpush3.msra.mxu0 %v1425_v53  ;;  %v2037_v52 = vadd.f32 %v4248_v0, %v1575_v8  ;;  %v2180_v53 = vpop.f32.mrf.mxu0  ;;  %v2110_v0 = vadd.f32 %v2109_v48, %v1587_v15  ;;  %v1452_v38 = vld [vmem:[%s4747_s4 + $0x640] sm:$0xff]  ;;  %v1466_v15 = vld [vmem:[%s4747_s4 + $0x6b0] sm:$0xff] }
 0xaa6   : > { %3040 = vmatprep.subr.mxu1 %v1408_v54  ;;  %3075 = vmatprep.subr.mxu0 %v1440_v55  ;;  %v1396_v54 = vld [vmem:[%s4747_s4 + $0x480] sm:$0xff]  ;;  %v1482_v48 = vld [vmem:[%s4747_s4 + $0x730] sm:$0xff] }
 0xaa7   : > { %3041 = vmatpush3.msra.mxu1 %v1392_v57  ;;  %3076 = vmatpush3.msra.mxu0 %v1424_v58  ;;  %v1380_v55 = vld [vmem:[%s4747_s4 + $0x400] sm:$0xff]  ;;  %v2181_v58 = vadd.f32 %v2180_v53, %v1595_v49  ;;  %v1465_v49 = vld [vmem:[%s4747_s4 + $0x6a8] sm:$0xff] }
 0xaa8   : > { %3042 = vmatprep.subr.mxu1 %v1407_v59  ;;  %3077 = vmatprep.subr.mxu0 %v1439_v60  ;;  %v1412_v57 = vld [vmem:[%s4747_s4 + $0x500] sm:$0xff]  ;;  %v2191_v59 = vmax.f32 %v1966_v51, 0.0  ;;  %v2193_v60 = vmax.f32 %v2037_v52, 0.0  ;;  %v1481_v51 = vld [vmem:[%s4747_s4 + $0x728] sm:$0xff] }
 0xaa9   : > { %3043 = vmatpush3.msra.mxu1 %v1391_v61  ;;  %3078 = vmatpush3.msra.mxu0 %v1423_v11  ;;  %v1475_v61 = vld [vmem:[%s4747_s4 + $0x6f8] sm:$0xff]  ;;  %v1484_v8 = vld [vmem:[%s4747_s4 + $0x740] sm:$0xff] }
 0xaaa   : > { %3044 = vmatprep.subr.mxu1 %v1406_v62  ;;  %3079 = vmatprep.subr.mxu0 %v1438_v63  ;;  %v1507_v11 = vld [vmem:[%s4747_s4 + $0x7f8] sm:$0xff]  ;;  %v2196_v63 = vmax.f32 %v2110_v0, 0.0  ;;  %v1464_v52 = vld [vmem:[%s4747_s4 + $0x6a0] sm:$0xff]  ;;  %v1591_v0 = vrot.slane %v4063_v43, %v3555_v29  ;;  %v1494_v29 = vld [vmem:[%s4747_s4 + $0x790] sm:$0xff] }
 0xaab   : > { %3045 = vmatpush3.msra.mxu1 %v1390_v1  ;;  %3080 = vmatpush3.msra.mxu0 %v1422_v4  ;;  %v1459_v62 = vld [vmem:[%s4747_s4 + $0x678] sm:$0xff]  ;;  %v2198_v4 = vmax.f32 %v2181_v58, 0.0  ;;  %v1496_v53 = vld [vmem:[%s4747_s4 + $0x7a0] sm:$0xff]  ;;  %v1462_v58 = vld [vmem:[%s4747_s4 + $0x690] sm:$0xff] }
 0xaac   : > { %3046 = vmatprep.subr.mxu1 %v1405_v5  ;;  %3081 = vmatprep.subr.mxu0 %v1437_v16  ;;  %v1491_v1 = vld [vmem:[%s4747_s4 + $0x778] sm:$0xff]  ;;  %v1474_v5 = vld [vmem:[%s4747_s4 + $0x6f0] sm:$0xff] }
 0xaad   : > { %3047 = vmatpush3.msra.mxu1 %v1389_v17  ;;  %3082 = vmatpush3.msra.mxu0 %v1421_v18  ;;  %v1506_v16 = vld [vmem:[%s4747_s4 + $0x7f0] sm:$0xff] }
 0xaae   : > { %3048 = vmatprep.subr.mxu1 %v1404_v19  ;;  %3083 = vmatprep.subr.mxu0 %v1436_v42  ;;  %v1458_v17 = vld [vmem:[%s4747_s4 + $0x670] sm:$0xff]  ;;  %v1473_v19 = vld [vmem:[%s4747_s4 + $0x6e8] sm:$0xff] }
 0xaaf   : > { %3049 = vmatpush3.msra.mxu1 %v1388_v39  ;;  %3084 = vmatpush3.msra.mxu0 %v1420_v22  ;;  %v1490_v18 = vld [vmem:[%s4747_s4 + $0x770] sm:$0xff]  ;;  %v1505_v42 = vld [vmem:[%s4747_s4 + $0x7e8] sm:$0xff] }
 0xab0   : > { %3050 = vmatprep.subr.mxu1 %v1403_v23  ;;  %3085 = vmatprep.subr.mxu0 %v1435_v24  ;;  %v1457_v39 = vld [vmem:[%s4747_s4 + $0x668] sm:$0xff]  ;;  %v1472_v23 = vld [vmem:[%s4747_s4 + $0x6e0] sm:$0xff]  ;;  %v1446_v43 = vld [vmem:[%s4747_s4 + $0x610] sm:$0xff] }
 0xab1   : > { %3051 = vmatpush3.msra.mxu1 %v1387_v25  ;;  %3086 = vmatpush3.msra.mxu0 %v1419_v26  ;;  %v1489_v22 = vld [vmem:[%s4747_s4 + $0x768] sm:$0xff]  ;;  %v1504_v24 = vld [vmem:[%s4747_s4 + $0x7e0] sm:$0xff] }
 0xab2   : > { %3052 = vmatprep.subr.mxu1 %v1402_v21  ;;  %3087 = vmatprep.subr.mxu0 %v1434_v27  ;;  %v1456_v25 = vld [vmem:[%s4747_s4 + $0x660] sm:$0xff]  ;;  %v1471_v21 = vld [vmem:[%s4747_s4 + $0x6d8] sm:$0xff] }
 0xab3   : > { %3053 = vmatpush3.msra.mxu1 %v1386_v28  ;;  %3088 = vmatpush3.msra.mxu0 %v1418_v30  ;;  %v1488_v26 = vld [vmem:[%s4747_s4 + $0x760] sm:$0xff]  ;;  %v1503_v27 = vld [vmem:[%s4747_s4 + $0x7d8] sm:$0xff] }
 0xab4   : > { %3054 = vmatprep.subr.mxu1 %v1401_v31  ;;  %3089 = vmatprep.subr.mxu0 %v1433_v10  ;;  %v1455_v28 = vld [vmem:[%s4747_s4 + $0x658] sm:$0xff]  ;;  %v1470_v31 = vld [vmem:[%s4747_s4 + $0x6d0] sm:$0xff] }
 0xab5   : > { %3055 = vmatpush3.msra.mxu1 %v1385_v32  ;;  %3090 = vmatpush3.msra.mxu0 %v1417_v7  ;;  %v1487_v30 = vld [vmem:[%s4747_s4 + $0x758] sm:$0xff]  ;;  %v1502_v10 = vld [vmem:[%s4747_s4 + $0x7d0] sm:$0xff] }
 0xab6   : > { %3056 = vmatprep.subr.mxu1 %v1400_v6  ;;  %3091 = vmatprep.subr.mxu0 %v1432_v12  ;;  %v1454_v32 = vld [vmem:[%s4747_s4 + $0x650] sm:$0xff]  ;;  %v1469_v6 = vld [vmem:[%s4747_s4 + $0x6c8] sm:$0xff] }
 0xab7   : > { %3057 = vmatpush3.msra.mxu1 %v1384_v33  ;;  %3092 = vmatpush3.msra.mxu0 %v1416_v34  ;;  %v1486_v7 = vld [vmem:[%s4747_s4 + $0x750] sm:$0xff]  ;;  %v1501_v12 = vld [vmem:[%s4747_s4 + $0x7c8] sm:$0xff] }
 0xab8   : > { %3058 = vmatprep.subr.mxu1 %v1399_v36  ;;  %3093 = vmatprep.subr.mxu0 %v1431_v37  ;;  %v1453_v33 = vld [vmem:[%s4747_s4 + $0x648] sm:$0xff]  ;;  %v1468_v36 = vld [vmem:[%s4747_s4 + $0x6c0] sm:$0xff] }
 0xab9   : > { %3059 = vmatpush3.msra.mxu1 %v1383_v41  ;;  %3094 = vmatpush3.msra.mxu0 %v1415_v45  ;;  %v1485_v34 = vld [vmem:[%s4747_s4 + $0x748] sm:$0xff]  ;;  %v1500_v37 = vld [vmem:[%s4747_s4 + $0x7c0] sm:$0xff]  ;;  %v1467_v41 = vld [vmem:[%s4747_s4 + $0x6b8] sm:$0xff] }
 0xaba   : > { %3060 = vmatprep.subr.mxu1 %v1398_v20  ;;  %3095 = vmatprep.subr.mxu0 %v1430_v9  ;;  %v1499_v45 = vld [vmem:[%s4747_s4 + $0x7b8] sm:$0xff] }
 0xabb   : > { %3061 = vmatpush3.msra.mxu1 %v1382_v46  ;;  %3096 = vmatpush3.msra.mxu0 %v1414_v47  ;;  %v1451_v20 = vld [vmem:[%s4747_s4 + $0x638] sm:$0xff]  ;;  %v1498_v46 = vld [vmem:[%s4747_s4 + $0x7b0] sm:$0xff] }
 0xabc   : > { %3062 = vmatprep.subr.mxu1 %v1397_v14  ;;  %3097 = vmatprep.subr.mxu0 %v1429_v50  ;;  %v1483_v9 = vld [vmem:[%s4747_s4 + $0x738] sm:$0xff]  ;;  %v1450_v47 = vld [vmem:[%s4747_s4 + $0x630] sm:$0xff]  ;;  %v1497_v14 = vld [vmem:[%s4747_s4 + $0x7a8] sm:$0xff] }
 0xabd   : > { %3063 = vmatpush3.msra.mxu1 %v1381_v13  ;;  %3098 = vmatpush3.msra.mxu0 %v1413_v56  ;;  %v1449_v50 = vld [vmem:[%s4747_s4 + $0x628] sm:$0xff]  ;;  %v1448_v13 = vld [vmem:[%s4747_s4 + $0x620] sm:$0xff] }
 0xabe   : > { %3064 = vmatprep.subr.mxu1 %v1396_v54  ;;  %3099 = vmatprep.subr.mxu0 %v1428_v3  ;;  %v1480_v56 = vld [vmem:[%s4747_s4 + $0x720] sm:$0xff]  ;;  %v1463_v54 = vld [vmem:[%s4747_s4 + $0x698] sm:$0xff] }
 0xabf   : > { %3065 = vmatpush3.msra.mxu1 %v1380_v55  ;;  %3100 = vmatpush3.msra.mxu0 %v1412_v57  ;;  %v1495_v3 = vld [vmem:[%s4747_s4 + $0x798] sm:$0xff] }
 0xac0   : > { %2544 = vmatmul.mubr.f32.vlgmr.msra.gmra.mxu1 %v2191_v59  ;;  %2614 = vmatmul.mubr.f32.vlgmr.msra.gmra.mxu0 %v2193_v60  ;;  %v1447_v55 = vld [vmem:[%s4747_s4 + $0x618] sm:$0xff]  ;;  %v1478_v59 = vld [vmem:[%s4747_s4 + $0x710] sm:$0xff]  ;;  %v1461_v60 = vld [vmem:[%s4747_s4 + $0x688] sm:$0xff] }
 0xac1   : > { %3104 = vmatprep.subr.mxu1 %v1475_v61  ;;  %3139 = vmatprep.subr.mxu0 %v1507_v11  ;;  %v1479_v57 = vld [vmem:[%s4747_s4 + $0x718] sm:$0xff]  ;;  %v1493_v61 = vld [vmem:[%s4747_s4 + $0x788] sm:$0xff]  ;;  %v2108_v11 = vadd.f32 %v4443_v35, %v4068_v44  ;;  %v1492_v44 = vld [vmem:[%s4747_s4 + $0x780] sm:$0xff] }
 0xac2   : > { %3105 = vmatpush3.msra.mxu1 %v1459_v62  ;;  %2683 = vmatprep.mubr.f32.mxu1 %v2196_v63  ;;  %v2179_v62 = vadd.f32 %v4456_v40, %v1591_v0  ;;  %v1445_v63 = vld [vmem:[%s4747_s4 + $0x608] sm:$0xff]  ;;  %v1444_v35 = vld [vmem:[%s4747_s4 + $0x600] sm:$0xff] }
 0xac3   : > { %3140 = vmatpush3.msra.mxu0 %v1491_v1  ;;  %2753 = vmatprep.mubr.f32.mxu0 %v2198_v4  ;;  %v1477_v1 = vld [vmem:[%s4747_s4 + $0x708] sm:$0xff]  ;;  %v1460_v4 = vld [vmem:[%s4747_s4 + $0x680] sm:$0xff] }
 0xac4   : > { %3106 = vmatprep.subr.mxu1 %v1474_v5  ;;  %3141 = vmatprep.subr.mxu0 %v1506_v16  ;;  %v1476_v40 = vld [vmem:[%s4747_s4 + $0x700] sm:$0xff]  ;;  %v2195_v5 = vmax.f32 %v2108_v11, 0.0  ;;  %v2197_v16 = vmax.f32 %v2179_v62, 0.0 }
 0xac5   : > { %3107 = vmatpush3.msra.mxu1 %v1458_v17  ;;  %3142 = vmatpush3.msra.mxu0 %v1490_v18 }
 0xac6   : > { %3108 = vmatprep.subr.mxu1 %v1473_v19  ;;  %3143 = vmatprep.subr.mxu0 %v1505_v42 }
 0xac7   : > { %3109 = vmatpush3.msra.mxu1 %v1457_v39  ;;  %3144 = vmatpush3.msra.mxu0 %v1489_v22  ;;  %v290_v22 = vld [vmem:[%s4748_s5 + $0x8] sm:$0x1] }
 0xac8   : > { %3110 = vmatprep.subr.mxu1 %v1472_v23  ;;  %3145 = vmatprep.subr.mxu0 %v1504_v24 }
 0xac9   : > { %3111 = vmatpush3.msra.mxu1 %v1456_v25  ;;  %3146 = vmatpush3.msra.mxu0 %v1488_v26 }
 0xaca   : > { %3112 = vmatprep.subr.mxu1 %v1471_v21  ;;  %3147 = vmatprep.subr.mxu0 %v1503_v27 }
 0xacb   : > { %3113 = vmatpush3.msra.mxu1 %v1455_v28  ;;  %3148 = vmatpush3.msra.mxu0 %v1487_v30 }
 0xacc   : > { %3114 = vmatprep.subr.mxu1 %v1470_v31  ;;  %3149 = vmatprep.subr.mxu0 %v1502_v10 }
 0xacd   : > { %3115 = vmatpush3.msra.mxu1 %v1454_v32  ;;  %3150 = vmatpush3.msra.mxu0 %v1486_v7 }
 0xace   : > { %3116 = vmatprep.subr.mxu1 %v1469_v6  ;;  %3151 = vmatprep.subr.mxu0 %v1501_v12 }
 0xacf   : > { %3117 = vmatpush3.msra.mxu1 %v1453_v33  ;;  %3152 = vmatpush3.msra.mxu0 %v1485_v34 }
 0xad0   : > { %3118 = vmatprep.subr.mxu1 %v1468_v36  ;;  %3153 = vmatprep.subr.mxu0 %v1500_v37 }
 0xad1   : > { %3119 = vmatpush3.msra.mxu1 %v1452_v38  ;;  %3154 = vmatpush3.msra.mxu0 %v1484_v8 }
 0xad2   : > { %3120 = vmatprep.subr.mxu1 %v1467_v41  ;;  %3155 = vmatprep.subr.mxu0 %v1499_v45 }
 0xad3   : > { %3121 = vmatpush3.msra.mxu1 %v1451_v20  ;;  %3156 = vmatpush3.msra.mxu0 %v1483_v9 }
 0xad4   : > { %3122 = vmatprep.subr.mxu1 %v1466_v15  ;;  %3157 = vmatprep.subr.mxu0 %v1498_v46 }
 0xad5   : > { %3123 = vmatpush3.msra.mxu1 %v1450_v47  ;;  %3158 = vmatpush3.msra.mxu0 %v1482_v48 }
 0xad6   : > { %3124 = vmatprep.subr.mxu1 %v1465_v49  ;;  %3159 = vmatprep.subr.mxu0 %v1497_v14 }
 0xad7   : > { %3125 = vmatpush3.msra.mxu1 %v1449_v50  ;;  %3160 = vmatpush3.msra.mxu0 %v1481_v51 }
 0xad8   : > { %3126 = vmatprep.subr.mxu1 %v1464_v52  ;;  %3161 = vmatprep.subr.mxu0 %v1496_v53 }
 0xad9   : > { %3127 = vmatpush3.msra.mxu1 %v1448_v13  ;;  %3162 = vmatpush3.msra.mxu0 %v1480_v56 }
 0xada   : > { %3128 = vmatprep.subr.mxu1 %v1463_v54  ;;  %3163 = vmatprep.subr.mxu0 %v1495_v3 }
 0xadb   : > { %3129 = vmatpush3.msra.mxu1 %v1447_v55  ;;  %3164 = vmatpush3.msra.mxu0 %v1479_v57 }
 0xadc   : > { %3130 = vmatprep.subr.mxu1 %v1462_v58  ;;  %3165 = vmatprep.subr.mxu0 %v1494_v29 }
 0xadd   : > { %3131 = vmatpush3.msra.mxu1 %v1446_v43  ;;  %3166 = vmatpush3.msra.mxu0 %v1478_v59 }
 0xade   : > { %3132 = vmatprep.subr.mxu1 %v1461_v60  ;;  %3167 = vmatprep.subr.mxu0 %v1493_v61 }
 0xadf   : > { %3133 = vmatpush3.msra.mxu1 %v1445_v63  ;;  %3168 = vmatpush3.msra.mxu0 %v1477_v1 }
 0xae0   : > { %3134 = vmatprep.subr.mxu1 %v1460_v4  ;;  %3169 = vmatprep.subr.mxu0 %v1492_v44 }
 0xae1   : > { %3135 = vmatpush3.msra.mxu1 %v1444_v35  ;;  %3170 = vmatpush3.msra.mxu0 %v1476_v40 }
 0xae2   : > { %2684 = vmatmul.mubr.f32.vlgmr.msra.gmra.mxu1 %v2195_v5  ;;  %2754 = vmatmul.mubr.f32.vlgmr.msra.gmra.mxu0 %v2197_v16 }
 0xb3d   : > { %v2926_v17 = vpop.f32.mrf.mxu1  ;;  %v2961_v19 = vpop.f32.mrf.mxu0 }
 0xb3f   : > { %v2927_v18 = vpop.f32.mrf.mxu1  ;;  %v2962_v23 = vpop.f32.mrf.mxu0 }
 0xb40   : > { %v2928_v39 = vadd.f32 %v2927_v18, %v2926_v17  ;;  %v2963_v27 = vadd.f32 %v2962_v23, %v2961_v19 }
 0xb42   : > { %v2266_v25 = vadd.f32 %v2928_v39, %v290_v22 }
 0xb44   : > { %v2336_v30 = vadd.f32 %v2963_v27, %v2266_v25 }
 0xb5e   : > { %v2996_v42 = vpop.f32.mrf.mxu1  ;;  %v3031_v26 = vpop.f32.mrf.mxu0 }
 0xb60   : > { %v2997_v24 = vpop.f32.mrf.mxu1  ;;  %v3032_v31 = vpop.f32.mrf.mxu0 }
 0xb61   : > { %v2998_v28 = vadd.f32 %v2997_v24, %v2996_v42  ;;  %v3033_v6 = vadd.f32 %v3032_v31, %v3031_v26 }
 0xb63   : > { %v2406_v32 = vadd.f32 %v2998_v28, %v2336_v30 }
 0xb65   : > { %v2476_v33 = vadd.f32 %v3033_v6, %v2406_v32 }
 0xb80   : > { %v3066_v21 = vpop.f32.mrf.mxu1  ;;  %v3101_v7 = vpop.f32.mrf.mxu0 }
 0xb82   : > { %v3067_v10 = vpop.f32.mrf.mxu1  ;;  %v3102_v34 = vpop.f32.mrf.mxu0 }
 0xb83   : > { %v3068_v12 = vadd.f32 %v3067_v10, %v3066_v21  ;;  %v3103_v8 = vadd.f32 %v3102_v34, %v3101_v7 }
 0xb85   : > { %v2546_v36 = vadd.f32 %v3068_v12, %v2476_v33 }
 0xb87   : > { %v2616_v20 = vadd.f32 %v3103_v8, %v2546_v36 }
 0xba2   : > { %v3136_v37 = vpop.f32.mrf.mxu1  ;;  %v3171_v38 = vpop.f32.mrf.mxu0 }
 0xba4   : > { %v3137_v41 = vpop.f32.mrf.mxu1  ;;  %v3172_v45 = vpop.f32.mrf.mxu0 }
 0xba5   : > { %v3138_v9 = vadd.f32 %v3137_v41, %v3136_v37  ;;  %v3173_v46 = vadd.f32 %v3172_v45, %v3171_v38 }
 0xba7   : > { %v2686_v15 = vadd.f32 %v3138_v9, %v2616_v20 }
 0xba9   : > { %v2756_v47 = vadd.f32 %v3173_v46, %v2686_v15 }
 0xbab   : > { %v2759_v48 = vadd.f32 %v2756_v47, %v3637_v2 }
 0xbad   : > { %2760 = vst.msk [vmem:[%s279_s23] sm:$0x1] %vm1508_vm6, %v2759_v48 }
 0xbae   : > { %3325 = shalt.err (!%p3322_p3)
}
 0xbaf   : > { %s3326_s19 = scalar_lea.hbm %s2772_s9, 16  ;;  %s3330_s21 = scalar_lea.hbm %s4750_s7, 64 }
 0xbb0   : > { %p3327_p4 = scmp.ne.s32.totalorder %s2772_s9, %s3326_s19  ;;  %p3331_p9 = scmp.lt.s32.totalorder %s2772_s9, %s4750_s7 }
 0xbb1   : > { %p3332_p10 = scmp.lt.s32.totalorder %s3330_s21, %s3326_s19 }
 0xbb2   : > { %p3328_p7 = pnand %p3327_p4, %p3470_p5 }
 0xbb3   : > { %p3333_p11 = por %p3332_p10, %p3331_p9 }
 0xbb4   : > { %p3329_p8 = pneg %p3328_p7 }
 0xbb6   : > { %p3334_p12 = pnand %p3333_p11, %p3329_p8 }
 0xbb8   : > { %3337 = shalt.err (!%p3334_p12)
}
 0xbb9   : > { %3236 = dma.vmem_to_hbm [thread:$0]  (%p3470_p5), %s2775_s29, 16, %s2772_s9, %s2762_s14  }
 0xbba PF: > { %p3242_p13 = scmp.ge.s32.totalorder %s3372_s27, 2  ;;  %s2786_s8 = sand.u32 1, %s3360_s24  }
 0xbbb   : > { %s2787_s13 = scalar_lea.sflag [#allocation3], %s2786_s8 }
 0xbbc   : > { %p3239_p0 = pnand %p3242_p13, %p3474_p6 }
 0xbbe   : > { %p3240_p1 = pneg %p3239_p0 }
 0xbc0   : > { %3355 = dma.done.wait (%p3240_p1), %s2787_s13, 16  }
 0xbc1   : > { %3357 = vsyncadd (%p3240_p1), %s2787_s13, 4294967280  ;;  %p17_p2 = scmp.ge.s32.totalorder %s3457_s30, 6   ;;  %s4753_s24 = smov %s3364_s25 }
 0xbc2   : > { %s4754_s25 = smov %s3368_s26  ;;  %s4755_s26 = smov %s3468_s10 }
 0xbc3   : > { %s4756_s27 = smov %s3457_s30  ;;  %19 = sbr.rel (!%p17_p2) target bundleno = 3 (0x3), region = 86 }
 0xbc8   :  { %2791 = vsyncpa [#allocation3], 1 }
 0xbc9   :  { %2793 = vsyncpa [#allocation3 + $0x1], 1 }

</bundles_post_ra>
